<compile_context>
chip_gen: v7x
topology: tpu7x:2x2x1
jax: 0.10.0
libtpu: 0.0.40
codegen_flags: <defaults>
</compile_context>

<pallas_src>
import functools

import jax
import jax.numpy as jnp
from jax.experimental import pallas as pl
from jax.experimental.pallas import tpu as pltpu  # noqa: F401  (kept for TPU-specific tuning hooks)


# ---------------- config (small shapes consistent with the module) ----------------
B, NT = 2, 8
H_OBS = 32           # config.state_encode.input_size
H_ACT = 16           # config.action_encode.input_size
HIDDEN = 64          # config.causal_block.hidden_size
N_HEAD = 2
HEAD_DIM = HIDDEN // N_HEAD
FFN = 128
OBS_OUT = H_OBS      # config.state_decode.output_size
ACT_OUT = H_ACT      # config.action_decode.output_size
OUT_LANES = 128      # lane-dense decoder output slab: [obs(32) | act(16) | pad]


# ---------------- fused forward kernel ----------------
def _sa_forward_kernel(
    # activations
    obs_ref, act_ref, bias_ref, tq_ref,
    # encoders
    sew_ref, seb_ref, aew_ref, aeb_ref,
    # causal block (pre-LN transformer layer)
    ln1g_ref, ln1b_ref,
    wq_ref, bq_ref, wk_ref, bk_ref, wv_ref, bv_ref,
    pw_ref, pb_ref, ln2g_ref, ln2b_ref,
    f1w_ref, f1b_ref, f2w_ref, f2b_ref,
    # state decoder (reads token slot 1), action decoder (reads token slot 0)
    sd1w_ref, sd1b_ref, sd2w_ref, sd2b_ref, sdow_ref, sdob_ref,
    ad1w_ref, ad1b_ref, ad2w_ref, ad2b_ref, adow_ref, adob_ref,
    # outputs (lane-dense slabs)
    dec_ref, cache_ref,
    *, n_tok, n_head, head_dim, inv_temp, obs_out_dim, act_out_dim, out_lanes):

    def mm(x, w_ref_, b_ref_):
        return jnp.dot(x, w_ref_[...], preferred_element_type=jnp.float32) + b_ref_[...]

    def layernorm(x, g_ref_, b_ref_):
        mu = jnp.mean(x, axis=-1, keepdims=True)
        var = jnp.mean((x - mu) ** 2, axis=-1, keepdims=True)
        return (x - mu) * jax.lax.rsqrt(var + 1e-5) * g_ref_[...] + b_ref_[...]

    # --- encoders (+ type query). Token layout inside the kernel is SLOT-MAJOR:
    #   rows [0, n_tok)        : obs-slot tokens  (batch-major, time-minor)
    #   rows [n_tok, 2*n_tok)  : act-slot tokens
    # The interleaved causal order of the original module is enforced purely through the
    # additive attention bias (bias_ref), so no sublane interleave / transpose is needed.
    obs_tok = jax.nn.gelu(mm(obs_ref[...], sew_ref, seb_ref)) + tq_ref[0:1, :]
    act_tok = jax.nn.gelu(mm(act_ref[...], aew_ref, aeb_ref)) + tq_ref[1:2, :]
    x = jnp.concatenate([obs_tok, act_tok], axis=0)            # (2*n_tok, HIDDEN)

    # --- causal self-attention (pre-LN); all (batch, head) pairs in one shot
    h = layernorm(x, ln1g_ref, ln1b_ref)
    q = mm(h, wq_ref, bq_ref)
    k = mm(h, wk_ref, bk_ref)
    v = mm(h, wv_ref, bv_ref)
    scale = 1.0 / (head_dim ** 0.5)
    bias = bias_ref[...]                                        # batch + interleaved-causal mask
    head_outs = []
    for hd in range(n_head):
        lo = hd * head_dim
        qh = q[:, lo:lo + head_dim]
        kh = k[:, lo:lo + head_dim]
        vh = v[:, lo:lo + head_dim]
        # q @ k^T without materializing a transpose of k
        s = jax.lax.dot_general(qh, kh, (((1,), (1,)), ((), ())),
                                preferred_element_type=jnp.float32) * scale + bias
        m = jnp.max(s, axis=-1, keepdims=True)
        e = jnp.exp(s - m)
        p_att = e * pl.reciprocal(jnp.sum(e, axis=-1, keepdims=True), approx=True)
        head_outs.append(jnp.dot(p_att, vh, preferred_element_type=jnp.float32))
    attn = jnp.concatenate(head_outs, axis=-1)
    x = x + mm(attn, pw_ref, pb_ref)

    # --- FFN (pre-LN)
    h2 = layernorm(x, ln2g_ref, ln2b_ref)
    x = x + mm(jax.nn.gelu(mm(h2, f1w_ref, f1b_ref)), f2w_ref, f2b_ref)

    x_slot0 = x[:n_tok, :]      # obs-slot token outputs -> action decoder
    x_slot1 = x[n_tok:, :]      # act-slot token outputs -> state decoder

    # lane-dense cache slab: one (batch, timestep) per row, lanes = [slot0 | slot1]
    cache_ref[...] = jnp.concatenate([x_slot0, x_slot1], axis=-1)

    # --- residual MLP decoders
    def res_mlp(z, w1, b1, w2, b2, wo, bo):
        hh = jax.nn.gelu(mm(z, w1, b1))
        hh = z + mm(hh, w2, b2)
        return mm(hh, wo, bo)

    obs_out = res_mlp(x_slot1, sd1w_ref, sd1b_ref, sd2w_ref, sd2b_ref, sdow_ref, sdob_ref)
    act_logits = res_mlp(x_slot0, ad1w_ref, ad1b_ref, ad2w_ref, ad2b_ref, adow_ref, adob_ref)

    # softmax(T) on the action head (exact reciprocal: rows must sum to 1)
    s2 = act_logits * inv_temp
    e2 = jnp.exp(s2 - jnp.max(s2, axis=-1, keepdims=True))
    act_prob = e2 * pl.reciprocal(jnp.sum(e2, axis=-1, keepdims=True), approx=False)

    pad = jnp.zeros((n_tok, out_lanes - obs_out_dim - act_out_dim), jnp.float32)
    dec_ref[...] = jnp.concatenate([obs_out, act_prob, pad], axis=-1)


# ---------------- static attention bias (batch separation + interleaved causal order) ----
@functools.lru_cache(maxsize=8)
def _attention_bias(b, nt):
    s = 2 * b * nt
    idx = jnp.arange(s)
    slot = idx // (b * nt)           # 0 = obs token, 1 = act token (slot-major layout)
    g = idx % (b * nt)
    batch = g // nt
    pos = 2 * (g % nt) + slot        # position in the interleaved [obs_t, act_t] sequence
    ok = (batch[:, None] == batch[None, :]) & (pos[None, :] <= pos[:, None])
    return jnp.where(ok, 0.0, -1e30).astype(jnp.float32)


# ---------------- parameters ----------------
def init_params(key):
    ks = iter(jax.random.split(key, 48))

    def w(shape, scale=0.02):
        return (scale * jax.random.normal(next(ks), shape)).astype(jnp.float32)

    def z(shape):
        return jnp.zeros(shape, jnp.float32)

    p = {
        "type_query": jax.random.normal(next(ks), (1, 1, 2, HIDDEN), dtype=jnp.float32),
        "mask_query": jax.random.normal(next(ks), (1, 1, H_OBS), dtype=jnp.float32),
        # MLPEncoder: linear + GELU
        "s_enc_w": w((H_OBS, HIDDEN)), "s_enc_b": z((1, HIDDEN)),
        "a_enc_w": w((H_ACT, HIDDEN)), "a_enc_b": z((1, HIDDEN)),
        # CausalBlock: one pre-LN transformer layer (q/k/v stored as the torch in_proj chunks)
        "ln1_g": jnp.ones((1, HIDDEN), jnp.float32), "ln1_b": z((1, HIDDEN)),
        "wq": w((HIDDEN, HIDDEN)), "bq": z((1, HIDDEN)),
        "wk": w((HIDDEN, HIDDEN)), "bk": z((1, HIDDEN)),
        "wv": w((HIDDEN, HIDDEN)), "bv": z((1, HIDDEN)),
        "proj_w": w((HIDDEN, HIDDEN)), "proj_b": z((1, HIDDEN)),
        "ln2_g": jnp.ones((1, HIDDEN), jnp.float32), "ln2_b": z((1, HIDDEN)),
        "ffn_w1": w((HIDDEN, FFN)), "ffn_b1": z((1, FFN)),
        "ffn_w2": w((FFN, HIDDEN)), "ffn_b2": z((1, HIDDEN)),
        # ResidualMLPDecoder (state)  <- token slot 1
        "sd_w1": w((HIDDEN, HIDDEN)), "sd_b1": z((1, HIDDEN)),
        "sd_w2": w((HIDDEN, HIDDEN)), "sd_b2": z((1, HIDDEN)),
        "sd_wo": w((HIDDEN, OBS_OUT)), "sd_bo": z((1, OBS_OUT)),
        # ResidualMLPDecoder (action) <- token slot 0, ends in softmax(T)
        "ad_w1": w((HIDDEN, HIDDEN)), "ad_b1": z((1, HIDDEN)),
        "ad_w2": w((HIDDEN, HIDDEN)), "ad_b2": z((1, HIDDEN)),
        "ad_wo": w((HIDDEN, ACT_OUT)), "ad_bo": z((1, ACT_OUT)),
    }
    return p


# ---------------- forward wrapper ----------------
def sa_decision_model_forward(p, s_arr, a_arr, key, cache=None, need_cache=True,
                              state_dropout=0.0, T=1.0, update_memory=True):
    b, nt, h_obs = s_arr.shape
    ba, nta, h_act = a_arr.shape
    assert ba == b and nta == nt

    # Stochastic observation noise / masking: statically skipped when state_dropout == 0.0
    # so no RNG ops land on the latency-critical path.
    if state_dropout > 0.0:
        # TODO(synk): fold into the fused kernel with pltpu.prng_seed/prng_random_bits if this
        # path becomes hot; kept as JAX glue for exact parity with the torch semantics.
        k1, k2, k3, k4, k5 = jax.random.split(key, 5)
        p_noise = 0.5 * state_dropout * jax.random.uniform(k1, (b, 1, 1)) * jnp.ones((b, nt, 1))
        p_mask = 0.5 * state_dropout * jax.random.uniform(k2, (b, 1, 1)) * jnp.ones((b, nt, 1))
        eps = jax.random.normal(k3, (b, nt, h_obs))
        dp_eps = jax.random.bernoulli(k4, p_noise).astype(jnp.float32)
        dp_mask = jax.random.bernoulli(k5, p_mask).astype(jnp.float32)
        observation_in = s_arr + eps * dp_eps
        observation_in = observation_in * (1.0 - dp_mask) + p["mask_query"] * dp_mask
    else:
        observation_in = s_arr

    obs2d = observation_in.reshape(b * nt, h_obs)
    act2d = a_arr.reshape(b * nt, h_act)
    attn_bias = _attention_bias(b, nt)
    tq = p["type_query"].reshape(2, HIDDEN)

    kernel = functools.partial(
        _sa_forward_kernel,
        n_tok=b * nt, n_head=N_HEAD, head_dim=HEAD_DIM, inv_temp=1.0 / float(T),
        obs_out_dim=OBS_OUT, act_out_dim=ACT_OUT, out_lanes=OUT_LANES)

    # Single fused invocation: no grid, all operands whole-tile VMEM resident (<200 KB total).
    dec_slab, cache_slab = pl.pallas_call(
        kernel,
        out_shape=(jax.ShapeDtypeStruct((b * nt, OUT_LANES), jnp.float32),
                   jax.ShapeDtypeStruct((b * nt, 2 * HIDDEN), jnp.float32)),
    )(obs2d, act2d, attn_bias, tq,
      p["s_enc_w"], p["s_enc_b"], p["a_enc_w"], p["a_enc_b"],
      p["ln1_g"], p["ln1_b"],
      p["wq"], p["bq"], p["wk"], p["bk"], p["wv"], p["bv"],
      p["proj_w"], p["proj_b"], p["ln2_g"], p["ln2_b"],
      p["ffn_w1"], p["ffn_b1"], p["ffn_w2"], p["ffn_b2"],
      p["sd_w1"], p["sd_b1"], p["sd_w2"], p["sd_b2"], p["sd_wo"], p["sd_bo"],
      p["ad_w1"], p["ad_b1"], p["ad_w2"], p["ad_b2"], p["ad_wo"], p["ad_bo"])

    obs_output = dec_slab[:, :OBS_OUT].reshape(b, nt, OBS_OUT)
    act_output = dec_slab[:, OBS_OUT:OBS_OUT + ACT_OUT].reshape(b, nt, ACT_OUT)
    # cache slab rows are (batch, timestep); lanes [0:H]=obs-slot token, [H:2H]=act-slot token
    new_cache = cache_slab.reshape(b, nt, 2, HIDDEN).reshape(b, nt * 2, HIDDEN)
    # TODO(synk): CausalBlock's recurrent memory/cache update is model-specific; new_cache here
    # is the layer's hidden states (need_cache=True, update_memory=True).
    if not need_cache:
        new_cache = None
    return obs_output, act_output, new_cache


# ---------------- pure-JAX reference (for correctness cross-check only) ----------------
def _reference_forward(p, s_arr, a_arr, T=1.0):
    b, nt, _ = s_arr.shape
    tq = p["type_query"].reshape(2, HIDDEN)
    obs = jax.nn.gelu(s_arr.reshape(b * nt, -1) @ p["s_enc_w"] + p["s_enc_b"]) + tq[0]
    act = jax.nn.gelu(a_arr.reshape(b * nt, -1) @ p["a_enc_w"] + p["a_enc_b"]) + tq[1]
    x = jnp.stack([obs.reshape(b, nt, HIDDEN), act.reshape(b, nt, HIDDEN)], axis=2)
    x = x.reshape(b, 2 * nt, HIDDEN)

    def ln(z, g, bb):
        mu = z.mean(-1, keepdims=True)
        var = ((z - mu) ** 2).mean(-1, keepdims=True)
        return (z - mu) * jax.lax.rsqrt(var + 1e-5) * g + bb

    h = ln(x, p["ln1_g"], p["ln1_b"])
    q = h @ p["wq"] + p["bq"]
    k = h @ p["wk"] + p["bk"]
    v = h @ p["wv"] + p["bv"]

    def heads(z):
        return z.reshape(b, 2 * nt, N_HEAD, HEAD_DIM).transpose(0, 2, 1, 3)

    sc = jnp.einsum("bhqd,bhkd->bhqk", heads(q), heads(k)) / (HEAD_DIM ** 0.5)
    causal = jnp.tril(jnp.ones((2 * nt, 2 * nt), bool))
    sc = jnp.where(causal, sc, -1e30)
    att = jax.nn.softmax(sc, axis=-1)
    ao = jnp.einsum("bhqk,bhkd->bhqd", att, heads(v)).transpose(0, 2, 1, 3).reshape(b, 2 * nt, HIDDEN)
    x = x + ao @ p["proj_w"] + p["proj_b"]
    h2 = ln(x, p["ln2_g"], p["ln2_b"])
    x = x + jax.nn.gelu(h2 @ p["ffn_w1"] + p["ffn_b1"]) @ p["ffn_w2"] + p["ffn_b2"]
    cache = x
    xr = x.reshape(b, nt, 2, HIDDEN)

    def dec(z, pre):
        hh = jax.nn.gelu(z @ p[pre + "_w1"] + p[pre + "_b1"])
        hh = z + hh @ p[pre + "_w2"] + p[pre + "_b2"]
        return hh @ p[pre + "_wo"] + p[pre + "_bo"]

    obs_o = dec(xr[:, :, 1].reshape(b * nt, HIDDEN), "sd").reshape(b, nt, OBS_OUT)
    act_o = jax.nn.softmax(dec(xr[:, :, 0].reshape(b * nt, HIDDEN), "ad") / T, axis=-1)
    return obs_o, act_o.reshape(b, nt, ACT_OUT), cache


if __name__ == "__main__":
    key = jax.random.PRNGKey(0)
    kp, ksd, ka, kf = jax.random.split(key, 4)
    params = init_params(kp)
    s_arr = jax.random.normal(ksd, (B, NT, H_OBS), dtype=jnp.float32)
    a_arr = jax.random.normal(ka, (B, NT, H_ACT), dtype=jnp.float32)

    obs_out, act_out, new_cache = sa_decision_model_forward(
        params, s_arr, a_arr, kf, state_dropout=0.0, T=1.0)
    jax.block_until_ready((obs_out, act_out, new_cache))

    assert obs_out.shape == (B, NT, OBS_OUT)
    assert act_out.shape == (B, NT, ACT_OUT)
    assert new_cache.shape == (B, NT * 2, HIDDEN)
    assert bool(jnp.all(jnp.isfinite(obs_out))) and bool(jnp.all(jnp.isfinite(act_out)))
    # action decoder ends in softmax(T): rows must sum to ~1 (exact reciprocal used there)
    assert jnp.allclose(jnp.sum(act_out, axis=-1), 1.0, atol=1e-4)

    # cross-check the fused kernel against a pure-JAX reference (loose tol: attention
    # softmax uses the approximate EUP reciprocal inside the kernel)
    ref_obs, ref_act, ref_cache = _reference_forward(params, s_arr, a_arr, T=1.0)
    assert float(jnp.max(jnp.abs(obs_out - ref_obs))) < 2e-2
    assert float(jnp.max(jnp.abs(act_out - ref_act))) < 2e-2
    assert float(jnp.max(jnp.abs(new_cache - ref_cache))) < 2e-2
    print("KERNEL_OK")
</pallas_src>

<mosaic_0001>
module attributes {stable_mosaic.version = 11 : i64} {
  func.func @_sa_forward_kernel(%arg0: memref<16x32xf32, #tpu.memory_space<vmem>>, %arg1: memref<16x16xf32, #tpu.memory_space<vmem>>, %arg2: memref<32x32xf32, #tpu.memory_space<vmem>>, %arg3: memref<2x64xf32, #tpu.memory_space<vmem>>, %arg4: memref<32x64xf32, #tpu.memory_space<vmem>>, %arg5: memref<1x64xf32, #tpu.memory_space<vmem>>, %arg6: memref<16x64xf32, #tpu.memory_space<vmem>>, %arg7: memref<1x64xf32, #tpu.memory_space<vmem>>, %arg8: memref<1x64xf32, #tpu.memory_space<vmem>>, %arg9: memref<1x64xf32, #tpu.memory_space<vmem>>, %arg10: memref<64x64xf32, #tpu.memory_space<vmem>>, %arg11: memref<1x64xf32, #tpu.memory_space<vmem>>, %arg12: memref<64x64xf32, #tpu.memory_space<vmem>>, %arg13: memref<1x64xf32, #tpu.memory_space<vmem>>, %arg14: memref<64x64xf32, #tpu.memory_space<vmem>>, %arg15: memref<1x64xf32, #tpu.memory_space<vmem>>, %arg16: memref<64x64xf32, #tpu.memory_space<vmem>>, %arg17: memref<1x64xf32, #tpu.memory_space<vmem>>, %arg18: memref<1x64xf32, #tpu.memory_space<vmem>>, %arg19: memref<1x64xf32, #tpu.memory_space<vmem>>, %arg20: memref<64x128xf32, #tpu.memory_space<vmem>>, %arg21: memref<1x128xf32, #tpu.memory_space<vmem>>, %arg22: memref<128x64xf32, #tpu.memory_space<vmem>>, %arg23: memref<1x64xf32, #tpu.memory_space<vmem>>, %arg24: memref<64x64xf32, #tpu.memory_space<vmem>>, %arg25: memref<1x64xf32, #tpu.memory_space<vmem>>, %arg26: memref<64x64xf32, #tpu.memory_space<vmem>>, %arg27: memref<1x64xf32, #tpu.memory_space<vmem>>, %arg28: memref<64x32xf32, #tpu.memory_space<vmem>>, %arg29: memref<1x32xf32, #tpu.memory_space<vmem>>, %arg30: memref<64x64xf32, #tpu.memory_space<vmem>>, %arg31: memref<1x64xf32, #tpu.memory_space<vmem>>, %arg32: memref<64x64xf32, #tpu.memory_space<vmem>>, %arg33: memref<1x64xf32, #tpu.memory_space<vmem>>, %arg34: memref<64x16xf32, #tpu.memory_space<vmem>>, %arg35: memref<1x16xf32, #tpu.memory_space<vmem>>, %arg36: memref<16x128xf32, #tpu.memory_space<vmem>>, %arg37: memref<16x128xf32, #tpu.memory_space<vmem>>) attributes {dimension_semantics = [], scalar_prefetch = 0 : i64, scratch_operands = 0 : i64, tpu.core_type = #tpu.core_type<tc>} {
    %c0 = arith.constant 0 : index
    %c0_0 = arith.constant 0 : index
    %0 = vector.load %arg0[%c0, %c0_0] : memref<16x32xf32, #tpu.memory_space<vmem>>, vector<16x32xf32>
    %c0_1 = arith.constant 0 : index
    %c0_2 = arith.constant 0 : index
    %1 = vector.load %arg4[%c0_1, %c0_2] : memref<32x64xf32, #tpu.memory_space<vmem>>, vector<32x64xf32>
    %cst = arith.constant dense<0.000000e+00> : vector<16x64xf32>
    %2 = tpu.matmul %0, %1, %cst {dimension_numbers = #tpu.dot_dimension_numbers<[1], [0], [0], [1], [0, 0, 1, 1], [], []>} : vector<16x32xf32>, vector<32x64xf32>, vector<16x64xf32> -> vector<16x64xf32>
    %c0_3 = arith.constant 0 : index
    %c0_4 = arith.constant 0 : index
    %3 = vector.load %arg5[%c0_3, %c0_4] : memref<1x64xf32, #tpu.memory_space<vmem>>, vector<1x64xf32>
    %4 = vector.broadcast %3 : vector<1x64xf32> to vector<16x64xf32>
    %5 = arith.addf %2, %4 : vector<16x64xf32>
    %6 = arith.mulf %5, %5 : vector<16x64xf32>
    %7 = arith.mulf %5, %6 : vector<16x64xf32>
    %cst_5 = arith.constant 4.471500e-02 : f32
    %8 = vector.broadcast %cst_5 : f32 to vector<16x64xf32>
    %9 = arith.mulf %8, %7 : vector<16x64xf32>
    %10 = arith.addf %5, %9 : vector<16x64xf32>
    %cst_6 = arith.constant 0.797884583 : f32
    %11 = vector.broadcast %cst_6 : f32 to vector<16x64xf32>
    %12 = arith.mulf %11, %10 : vector<16x64xf32>
    %13 = math.tanh %12 : vector<16x64xf32>
    %cst_7 = arith.constant 1.000000e+00 : f32
    %14 = vector.broadcast %cst_7 : f32 to vector<16x64xf32>
    %15 = arith.addf %14, %13 : vector<16x64xf32>
    %cst_8 = arith.constant 5.000000e-01 : f32
    %16 = vector.broadcast %cst_8 : f32 to vector<16x64xf32>
    %17 = arith.mulf %16, %15 : vector<16x64xf32>
    %18 = arith.mulf %5, %17 : vector<16x64xf32>
    %c0_9 = arith.constant 0 : index
    %c0_10 = arith.constant 0 : index
    %19 = vector.load %arg3[%c0_9, %c0_10] : memref<2x64xf32, #tpu.memory_space<vmem>>, vector<1x64xf32>
    %20 = vector.broadcast %19 : vector<1x64xf32> to vector<16x64xf32>
    %21 = arith.addf %18, %20 : vector<16x64xf32>
    %c0_11 = arith.constant 0 : index
    %c0_12 = arith.constant 0 : index
    %22 = vector.load %arg1[%c0_11, %c0_12] : memref<16x16xf32, #tpu.memory_space<vmem>>, vector<16x16xf32>
    %c0_13 = arith.constant 0 : index
    %c0_14 = arith.constant 0 : index
    %23 = vector.load %arg6[%c0_13, %c0_14] : memref<16x64xf32, #tpu.memory_space<vmem>>, vector<16x64xf32>
    %cst_15 = arith.constant dense<0.000000e+00> : vector<16x64xf32>
    %24 = tpu.matmul %22, %23, %cst_15 {dimension_numbers = #tpu.dot_dimension_numbers<[1], [0], [0], [1], [0, 0, 1, 1], [], []>} : vector<16x16xf32>, vector<16x64xf32>, vector<16x64xf32> -> vector<16x64xf32>
    %c0_16 = arith.constant 0 : index
    %c0_17 = arith.constant 0 : index
    %25 = vector.load %arg7[%c0_16, %c0_17] : memref<1x64xf32, #tpu.memory_space<vmem>>, vector<1x64xf32>
    %26 = vector.broadcast %25 : vector<1x64xf32> to vector<16x64xf32>
    %27 = arith.addf %24, %26 : vector<16x64xf32>
    %28 = arith.mulf %27, %27 : vector<16x64xf32>
    %29 = arith.mulf %27, %28 : vector<16x64xf32>
    %cst_18 = arith.constant 4.471500e-02 : f32
    %30 = vector.broadcast %cst_18 : f32 to vector<16x64xf32>
    %31 = arith.mulf %30, %29 : vector<16x64xf32>
    %32 = arith.addf %27, %31 : vector<16x64xf32>
    %cst_19 = arith.constant 0.797884583 : f32
    %33 = vector.broadcast %cst_19 : f32 to vector<16x64xf32>
    %34 = arith.mulf %33, %32 : vector<16x64xf32>
    %35 = math.tanh %34 : vector<16x64xf32>
    %cst_20 = arith.constant 1.000000e+00 : f32
    %36 = vector.broadcast %cst_20 : f32 to vector<16x64xf32>
    %37 = arith.addf %36, %35 : vector<16x64xf32>
    %cst_21 = arith.constant 5.000000e-01 : f32
    %38 = vector.broadcast %cst_21 : f32 to vector<16x64xf32>
    %39 = arith.mulf %38, %37 : vector<16x64xf32>
    %40 = arith.mulf %27, %39 : vector<16x64xf32>
    %c1 = arith.constant 1 : index
    %c0_22 = arith.constant 0 : index
    %41 = vector.load %arg3[%c1, %c0_22] : memref<2x64xf32, #tpu.memory_space<vmem>>, vector<1x64xf32>
    %42 = vector.broadcast %41 : vector<1x64xf32> to vector<16x64xf32>
    %43 = arith.addf %40, %42 : vector<16x64xf32>
    %44 = tpu.concatenate %21, %43 in 0 : vector<16x64xf32>, vector<16x64xf32> -> vector<32x64xf32>
    %cst_23 = arith.constant dense<0.000000e+00> : vector<32xf32>
    %45 = vector.multi_reduction <add>, %44, %cst_23 [1] : vector<32x64xf32> to vector<32xf32>
    %46 = vector.shape_cast %45 : vector<32xf32> to vector<32x1xf32>
    %cst_24 = arith.constant 6.400000e+01 : f32
    %47 = vector.broadcast %cst_24 : f32 to vector<32x1xf32>
    %48 = arith.divf %46, %47 : vector<32x1xf32>
    %49 = vector.broadcast %48 : vector<32x1xf32> to vector<32x64xf32>
    %50 = arith.subf %44, %49 : vector<32x64xf32>
    %51 = arith.mulf %50, %50 : vector<32x64xf32>
    %cst_25 = arith.constant dense<0.000000e+00> : vector<32xf32>
    %52 = vector.multi_reduction <add>, %51, %cst_25 [1] : vector<32x64xf32> to vector<32xf32>
    %53 = vector.shape_cast %52 : vector<32xf32> to vector<32x1xf32>
    %cst_26 = arith.constant 6.400000e+01 : f32
    %54 = vector.broadcast %cst_26 : f32 to vector<32x1xf32>
    %55 = arith.divf %53, %54 : vector<32x1xf32>
    %56 = vector.broadcast %48 : vector<32x1xf32> to vector<32x64xf32>
    %57 = arith.subf %44, %56 : vector<32x64xf32>
    %cst_27 = arith.constant 9.99999974E-6 : f32
    %58 = vector.broadcast %cst_27 : f32 to vector<32x1xf32>
    %59 = arith.addf %55, %58 : vector<32x1xf32>
    %60 = math.rsqrt %59 : vector<32x1xf32>
    %61 = vector.broadcast %60 : vector<32x1xf32> to vector<32x64xf32>
    %62 = arith.mulf %57, %61 : vector<32x64xf32>
    %c0_28 = arith.constant 0 : index
    %c0_29 = arith.constant 0 : index
    %63 = vector.load %arg8[%c0_28, %c0_29] : memref<1x64xf32, #tpu.memory_space<vmem>>, vector<1x64xf32>
    %64 = vector.broadcast %63 : vector<1x64xf32> to vector<32x64xf32>
    %65 = arith.mulf %62, %64 : vector<32x64xf32>
    %c0_30 = arith.constant 0 : index
    %c0_31 = arith.constant 0 : index
    %66 = vector.load %arg9[%c0_30, %c0_31] : memref<1x64xf32, #tpu.memory_space<vmem>>, vector<1x64xf32>
    %67 = vector.broadcast %66 : vector<1x64xf32> to vector<32x64xf32>
    %68 = arith.addf %65, %67 : vector<32x64xf32>
    %c0_32 = arith.constant 0 : index
    %c0_33 = arith.constant 0 : index
    %69 = vector.load %arg10[%c0_32, %c0_33] : memref<64x64xf32, #tpu.memory_space<vmem>>, vector<64x64xf32>
    %cst_34 = arith.constant dense<0.000000e+00> : vector<32x64xf32>
    %70 = tpu.matmul %68, %69, %cst_34 {dimension_numbers = #tpu.dot_dimension_numbers<[1], [0], [0], [1], [0, 0, 1, 1], [], []>} : vector<32x64xf32>, vector<64x64xf32>, vector<32x64xf32> -> vector<32x64xf32>
    %c0_35 = arith.constant 0 : index
    %c0_36 = arith.constant 0 : index
    %71 = vector.load %arg11[%c0_35, %c0_36] : memref<1x64xf32, #tpu.memory_space<vmem>>, vector<1x64xf32>
    %72 = vector.broadcast %71 : vector<1x64xf32> to vector<32x64xf32>
    %73 = arith.addf %70, %72 : vector<32x64xf32>
    %c0_37 = arith.constant 0 : index
    %c0_38 = arith.constant 0 : index
    %74 = vector.load %arg12[%c0_37, %c0_38] : memref<64x64xf32, #tpu.memory_space<vmem>>, vector<64x64xf32>
    %cst_39 = arith.constant dense<0.000000e+00> : vector<32x64xf32>
    %75 = tpu.matmul %68, %74, %cst_39 {dimension_numbers = #tpu.dot_dimension_numbers<[1], [0], [0], [1], [0, 0, 1, 1], [], []>} : vector<32x64xf32>, vector<64x64xf32>, vector<32x64xf32> -> vector<32x64xf32>
    %c0_40 = arith.constant 0 : index
    %c0_41 = arith.constant 0 : index
    %76 = vector.load %arg13[%c0_40, %c0_41] : memref<1x64xf32, #tpu.memory_space<vmem>>, vector<1x64xf32>
    %77 = vector.broadcast %76 : vector<1x64xf32> to vector<32x64xf32>
    %78 = arith.addf %75, %77 : vector<32x64xf32>
    %c0_42 = arith.constant 0 : index
    %c0_43 = arith.constant 0 : index
    %79 = vector.load %arg14[%c0_42, %c0_43] : memref<64x64xf32, #tpu.memory_space<vmem>>, vector<64x64xf32>
    %cst_44 = arith.constant dense<0.000000e+00> : vector<32x64xf32>
    %80 = tpu.matmul %68, %79, %cst_44 {dimension_numbers = #tpu.dot_dimension_numbers<[1], [0], [0], [1], [0, 0, 1, 1], [], []>} : vector<32x64xf32>, vector<64x64xf32>, vector<32x64xf32> -> vector<32x64xf32>
    %c0_45 = arith.constant 0 : index
    %c0_46 = arith.constant 0 : index
    %81 = vector.load %arg15[%c0_45, %c0_46] : memref<1x64xf32, #tpu.memory_space<vmem>>, vector<1x64xf32>
    %82 = vector.broadcast %81 : vector<1x64xf32> to vector<32x64xf32>
    %83 = arith.addf %80, %82 : vector<32x64xf32>
    %c0_47 = arith.constant 0 : index
    %c0_48 = arith.constant 0 : index
    %84 = vector.load %arg2[%c0_47, %c0_48] : memref<32x32xf32, #tpu.memory_space<vmem>>, vector<32x32xf32>
    %85 = vector.extract_strided_slice %73 {offsets = [0, 0], sizes = [32, 32], strides = [1, 1]} : vector<32x64xf32> to vector<32x32xf32>
    %86 = vector.extract_strided_slice %78 {offsets = [0, 0], sizes = [32, 32], strides = [1, 1]} : vector<32x64xf32> to vector<32x32xf32>
    %87 = vector.extract_strided_slice %83 {offsets = [0, 0], sizes = [32, 32], strides = [1, 1]} : vector<32x64xf32> to vector<32x32xf32>
    %cst_49 = arith.constant dense<0.000000e+00> : vector<32x32xf32>
    %88 = tpu.matmul %85, %86, %cst_49 {dimension_numbers = #tpu.dot_dimension_numbers<[1], [1], [0], [0], [0, 0, 1, 0], [], []>} : vector<32x32xf32>, vector<32x32xf32>, vector<32x32xf32> -> vector<32x32xf32>
    %cst_50 = arith.constant 0.176776692 : f32
    %89 = vector.broadcast %cst_50 : f32 to vector<32x32xf32>
    %90 = arith.mulf %88, %89 : vector<32x32xf32>
    %91 = arith.addf %90, %84 : vector<32x32xf32>
    %cst_51 = arith.constant dense<0xFF800000> : vector<32xf32>
    %92 = vector.multi_reduction <maximumf>, %91, %cst_51 [1] : vector<32x32xf32> to vector<32xf32>
    %93 = vector.shape_cast %92 : vector<32xf32> to vector<32x1xf32>
    %94 = vector.broadcast %93 : vector<32x1xf32> to vector<32x32xf32>
    %95 = arith.subf %91, %94 : vector<32x32xf32>
    %96 = math.exp %95 : vector<32x32xf32>
    %cst_52 = arith.constant dense<0.000000e+00> : vector<32xf32>
    %97 = vector.multi_reduction <add>, %96, %cst_52 [1] : vector<32x32xf32> to vector<32xf32>
    %98 = vector.shape_cast %97 : vector<32xf32> to vector<32x1xf32>
    %99 = tpu.reciprocal %98 {approx = true} : vector<32x1xf32> -> vector<32x1xf32>
    %100 = vector.broadcast %99 : vector<32x1xf32> to vector<32x32xf32>
    %101 = arith.mulf %96, %100 : vector<32x32xf32>
    %cst_53 = arith.constant dense<0.000000e+00> : vector<32x32xf32>
    %102 = tpu.matmul %101, %87, %cst_53 {dimension_numbers = #tpu.dot_dimension_numbers<[1], [0], [0], [1], [0, 0, 1, 1], [], []>} : vector<32x32xf32>, vector<32x32xf32>, vector<32x32xf32> -> vector<32x32xf32>
    %103 = vector.extract_strided_slice %73 {offsets = [0, 32], sizes = [32, 32], strides = [1, 1]} : vector<32x64xf32> to vector<32x32xf32>
    %104 = vector.extract_strided_slice %78 {offsets = [0, 32], sizes = [32, 32], strides = [1, 1]} : vector<32x64xf32> to vector<32x32xf32>
    %105 = vector.extract_strided_slice %83 {offsets = [0, 32], sizes = [32, 32], strides = [1, 1]} : vector<32x64xf32> to vector<32x32xf32>
    %cst_54 = arith.constant dense<0.000000e+00> : vector<32x32xf32>
    %106 = tpu.matmul %103, %104, %cst_54 {dimension_numbers = #tpu.dot_dimension_numbers<[1], [1], [0], [0], [0, 0, 1, 0], [], []>} : vector<32x32xf32>, vector<32x32xf32>, vector<32x32xf32> -> vector<32x32xf32>
    %cst_55 = arith.constant 0.176776692 : f32
    %107 = vector.broadcast %cst_55 : f32 to vector<32x32xf32>
    %108 = arith.mulf %106, %107 : vector<32x32xf32>
    %109 = arith.addf %108, %84 : vector<32x32xf32>
    %cst_56 = arith.constant dense<0xFF800000> : vector<32xf32>
    %110 = vector.multi_reduction <maximumf>, %109, %cst_56 [1] : vector<32x32xf32> to vector<32xf32>
    %111 = vector.shape_cast %110 : vector<32xf32> to vector<32x1xf32>
    %112 = vector.broadcast %111 : vector<32x1xf32> to vector<32x32xf32>
    %113 = arith.subf %109, %112 : vector<32x32xf32>
    %114 = math.exp %113 : vector<32x32xf32>
    %cst_57 = arith.constant dense<0.000000e+00> : vector<32xf32>
    %115 = vector.multi_reduction <add>, %114, %cst_57 [1] : vector<32x32xf32> to vector<32xf32>
    %116 = vector.shape_cast %115 : vector<32xf32> to vector<32x1xf32>
    %117 = tpu.reciprocal %116 {approx = true} : vector<32x1xf32> -> vector<32x1xf32>
    %118 = vector.broadcast %117 : vector<32x1xf32> to vector<32x32xf32>
    %119 = arith.mulf %114, %118 : vector<32x32xf32>
    %cst_58 = arith.constant dense<0.000000e+00> : vector<32x32xf32>
    %120 = tpu.matmul %119, %105, %cst_58 {dimension_numbers = #tpu.dot_dimension_numbers<[1], [0], [0], [1], [0, 0, 1, 1], [], []>} : vector<32x32xf32>, vector<32x32xf32>, vector<32x32xf32> -> vector<32x32xf32>
    %121 = tpu.concatenate %102, %120 in 1 : vector<32x32xf32>, vector<32x32xf32> -> vector<32x64xf32>
    %c0_59 = arith.constant 0 : index
    %c0_60 = arith.constant 0 : index
    %122 = vector.load %arg16[%c0_59, %c0_60] : memref<64x64xf32, #tpu.memory_space<vmem>>, vector<64x64xf32>
    %cst_61 = arith.constant dense<0.000000e+00> : vector<32x64xf32>
    %123 = tpu.matmul %121, %122, %cst_61 {dimension_numbers = #tpu.dot_dimension_numbers<[1], [0], [0], [1], [0, 0, 1, 1], [], []>} : vector<32x64xf32>, vector<64x64xf32>, vector<32x64xf32> -> vector<32x64xf32>
    %c0_62 = arith.constant 0 : index
    %c0_63 = arith.constant 0 : index
    %124 = vector.load %arg17[%c0_62, %c0_63] : memref<1x64xf32, #tpu.memory_space<vmem>>, vector<1x64xf32>
    %125 = vector.broadcast %124 : vector<1x64xf32> to vector<32x64xf32>
    %126 = arith.addf %123, %125 : vector<32x64xf32>
    %127 = arith.addf %44, %126 : vector<32x64xf32>
    %cst_64 = arith.constant dense<0.000000e+00> : vector<32xf32>
    %128 = vector.multi_reduction <add>, %127, %cst_64 [1] : vector<32x64xf32> to vector<32xf32>
    %129 = vector.shape_cast %128 : vector<32xf32> to vector<32x1xf32>
    %cst_65 = arith.constant 6.400000e+01 : f32
    %130 = vector.broadcast %cst_65 : f32 to vector<32x1xf32>
    %131 = arith.divf %129, %130 : vector<32x1xf32>
    %132 = vector.broadcast %131 : vector<32x1xf32> to vector<32x64xf32>
    %133 = arith.subf %127, %132 : vector<32x64xf32>
    %134 = arith.mulf %133, %133 : vector<32x64xf32>
    %cst_66 = arith.constant dense<0.000000e+00> : vector<32xf32>
    %135 = vector.multi_reduction <add>, %134, %cst_66 [1] : vector<32x64xf32> to vector<32xf32>
    %136 = vector.shape_cast %135 : vector<32xf32> to vector<32x1xf32>
    %cst_67 = arith.constant 6.400000e+01 : f32
    %137 = vector.broadcast %cst_67 : f32 to vector<32x1xf32>
    %138 = arith.divf %136, %137 : vector<32x1xf32>
    %139 = vector.broadcast %131 : vector<32x1xf32> to vector<32x64xf32>
    %140 = arith.subf %127, %139 : vector<32x64xf32>
    %cst_68 = arith.constant 9.99999974E-6 : f32
    %141 = vector.broadcast %cst_68 : f32 to vector<32x1xf32>
    %142 = arith.addf %138, %141 : vector<32x1xf32>
    %143 = math.rsqrt %142 : vector<32x1xf32>
    %144 = vector.broadcast %143 : vector<32x1xf32> to vector<32x64xf32>
    %145 = arith.mulf %140, %144 : vector<32x64xf32>
    %c0_69 = arith.constant 0 : index
    %c0_70 = arith.constant 0 : index
    %146 = vector.load %arg18[%c0_69, %c0_70] : memref<1x64xf32, #tpu.memory_space<vmem>>, vector<1x64xf32>
    %147 = vector.broadcast %146 : vector<1x64xf32> to vector<32x64xf32>
    %148 = arith.mulf %145, %147 : vector<32x64xf32>
    %c0_71 = arith.constant 0 : index
    %c0_72 = arith.constant 0 : index
    %149 = vector.load %arg19[%c0_71, %c0_72] : memref<1x64xf32, #tpu.memory_space<vmem>>, vector<1x64xf32>
    %150 = vector.broadcast %149 : vector<1x64xf32> to vector<32x64xf32>
    %151 = arith.addf %148, %150 : vector<32x64xf32>
    %c0_73 = arith.constant 0 : index
    %c0_74 = arith.constant 0 : index
    %152 = vector.load %arg20[%c0_73, %c0_74] : memref<64x128xf32, #tpu.memory_space<vmem>>, vector<64x128xf32>
    %cst_75 = arith.constant dense<0.000000e+00> : vector<32x128xf32>
    %153 = tpu.matmul %151, %152, %cst_75 {dimension_numbers = #tpu.dot_dimension_numbers<[1], [0], [0], [1], [0, 0, 1, 1], [], []>} : vector<32x64xf32>, vector<64x128xf32>, vector<32x128xf32> -> vector<32x128xf32>
    %c0_76 = arith.constant 0 : index
    %c0_77 = arith.constant 0 : index
    %154 = vector.load %arg21[%c0_76, %c0_77] : memref<1x128xf32, #tpu.memory_space<vmem>>, vector<1x128xf32>
    %155 = vector.broadcast %154 : vector<1x128xf32> to vector<32x128xf32>
    %156 = arith.addf %153, %155 : vector<32x128xf32>
    %157 = arith.mulf %156, %156 : vector<32x128xf32>
    %158 = arith.mulf %156, %157 : vector<32x128xf32>
    %cst_78 = arith.constant 4.471500e-02 : f32
    %159 = vector.broadcast %cst_78 : f32 to vector<32x128xf32>
    %160 = arith.mulf %159, %158 : vector<32x128xf32>
    %161 = arith.addf %156, %160 : vector<32x128xf32>
    %cst_79 = arith.constant 0.797884583 : f32
    %162 = vector.broadcast %cst_79 : f32 to vector<32x128xf32>
    %163 = arith.mulf %162, %161 : vector<32x128xf32>
    %164 = math.tanh %163 : vector<32x128xf32>
    %cst_80 = arith.constant 1.000000e+00 : f32
    %165 = vector.broadcast %cst_80 : f32 to vector<32x128xf32>
    %166 = arith.addf %165, %164 : vector<32x128xf32>
    %cst_81 = arith.constant 5.000000e-01 : f32
    %167 = vector.broadcast %cst_81 : f32 to vector<32x128xf32>
    %168 = arith.mulf %167, %166 : vector<32x128xf32>
    %169 = arith.mulf %156, %168 : vector<32x128xf32>
    %c0_82 = arith.constant 0 : index
    %c0_83 = arith.constant 0 : index
    %170 = vector.load %arg22[%c0_82, %c0_83] : memref<128x64xf32, #tpu.memory_space<vmem>>, vector<128x64xf32>
    %cst_84 = arith.constant dense<0.000000e+00> : vector<32x64xf32>
    %171 = tpu.matmul %169, %170, %cst_84 {dimension_numbers = #tpu.dot_dimension_numbers<[1], [0], [0], [1], [0, 0, 1, 1], [], []>} : vector<32x128xf32>, vector<128x64xf32>, vector<32x64xf32> -> vector<32x64xf32>
    %c0_85 = arith.constant 0 : index
    %c0_86 = arith.constant 0 : index
    %172 = vector.load %arg23[%c0_85, %c0_86] : memref<1x64xf32, #tpu.memory_space<vmem>>, vector<1x64xf32>
    %173 = vector.broadcast %172 : vector<1x64xf32> to vector<32x64xf32>
    %174 = arith.addf %171, %173 : vector<32x64xf32>
    %175 = arith.addf %127, %174 : vector<32x64xf32>
    %176 = vector.extract_strided_slice %175 {offsets = [0, 0], sizes = [16, 64], strides = [1, 1]} : vector<32x64xf32> to vector<16x64xf32>
    %177 = vector.extract_strided_slice %175 {offsets = [16, 0], sizes = [16, 64], strides = [1, 1]} : vector<32x64xf32> to vector<16x64xf32>
    %178 = tpu.concatenate %176, %177 in 1 : vector<16x64xf32>, vector<16x64xf32> -> vector<16x128xf32>
    %c0_87 = arith.constant 0 : index
    %c0_88 = arith.constant 0 : index
    %179 = vector.load %arg37[%c0_87, %c0_88] : memref<16x128xf32, #tpu.memory_space<vmem>>, vector<16x128xf32>
    tpu.vector_store %arg37[%c0_87, %c0_88], %178 {strides = array<i32>} : memref<16x128xf32, #tpu.memory_space<vmem>>, vector<16x128xf32>,
    %c0_89 = arith.constant 0 : index
    %c0_90 = arith.constant 0 : index
    %180 = vector.load %arg24[%c0_89, %c0_90] : memref<64x64xf32, #tpu.memory_space<vmem>>, vector<64x64xf32>
    %cst_91 = arith.constant dense<0.000000e+00> : vector<16x64xf32>
    %181 = tpu.matmul %177, %180, %cst_91 {dimension_numbers = #tpu.dot_dimension_numbers<[1], [0], [0], [1], [0, 0, 1, 1], [], []>} : vector<16x64xf32>, vector<64x64xf32>, vector<16x64xf32> -> vector<16x64xf32>
    %c0_92 = arith.constant 0 : index
    %c0_93 = arith.constant 0 : index
    %182 = vector.load %arg25[%c0_92, %c0_93] : memref<1x64xf32, #tpu.memory_space<vmem>>, vector<1x64xf32>
    %183 = vector.broadcast %182 : vector<1x64xf32> to vector<16x64xf32>
    %184 = arith.addf %181, %183 : vector<16x64xf32>
    %185 = arith.mulf %184, %184 : vector<16x64xf32>
    %186 = arith.mulf %184, %185 : vector<16x64xf32>
    %cst_94 = arith.constant 4.471500e-02 : f32
    %187 = vector.broadcast %cst_94 : f32 to vector<16x64xf32>
    %188 = arith.mulf %187, %186 : vector<16x64xf32>
    %189 = arith.addf %184, %188 : vector<16x64xf32>
    %cst_95 = arith.constant 0.797884583 : f32
    %190 = vector.broadcast %cst_95 : f32 to vector<16x64xf32>
    %191 = arith.mulf %190, %189 : vector<16x64xf32>
    %192 = math.tanh %191 : vector<16x64xf32>
    %cst_96 = arith.constant 1.000000e+00 : f32
    %193 = vector.broadcast %cst_96 : f32 to vector<16x64xf32>
    %194 = arith.addf %193, %192 : vector<16x64xf32>
    %cst_97 = arith.constant 5.000000e-01 : f32
    %195 = vector.broadcast %cst_97 : f32 to vector<16x64xf32>
    %196 = arith.mulf %195, %194 : vector<16x64xf32>
    %197 = arith.mulf %184, %196 : vector<16x64xf32>
    %c0_98 = arith.constant 0 : index
    %c0_99 = arith.constant 0 : index
    %198 = vector.load %arg26[%c0_98, %c0_99] : memref<64x64xf32, #tpu.memory_space<vmem>>, vector<64x64xf32>
    %cst_100 = arith.constant dense<0.000000e+00> : vector<16x64xf32>
    %199 = tpu.matmul %197, %198, %cst_100 {dimension_numbers = #tpu.dot_dimension_numbers<[1], [0], [0], [1], [0, 0, 1, 1], [], []>} : vector<16x64xf32>, vector<64x64xf32>, vector<16x64xf32> -> vector<16x64xf32>
    %c0_101 = arith.constant 0 : index
    %c0_102 = arith.constant 0 : index
    %200 = vector.load %arg27[%c0_101, %c0_102] : memref<1x64xf32, #tpu.memory_space<vmem>>, vector<1x64xf32>
    %201 = vector.broadcast %200 : vector<1x64xf32> to vector<16x64xf32>
    %202 = arith.addf %199, %201 : vector<16x64xf32>
    %203 = arith.addf %177, %202 : vector<16x64xf32>
    %c0_103 = arith.constant 0 : index
    %c0_104 = arith.constant 0 : index
    %204 = vector.load %arg28[%c0_103, %c0_104] : memref<64x32xf32, #tpu.memory_space<vmem>>, vector<64x32xf32>
    %cst_105 = arith.constant dense<0.000000e+00> : vector<16x32xf32>
    %205 = tpu.matmul %203, %204, %cst_105 {dimension_numbers = #tpu.dot_dimension_numbers<[1], [0], [0], [1], [0, 0, 1, 1], [], []>} : vector<16x64xf32>, vector<64x32xf32>, vector<16x32xf32> -> vector<16x32xf32>
    %c0_106 = arith.constant 0 : index
    %c0_107 = arith.constant 0 : index
    %206 = vector.load %arg29[%c0_106, %c0_107] : memref<1x32xf32, #tpu.memory_space<vmem>>, vector<1x32xf32>
    %207 = vector.broadcast %206 : vector<1x32xf32> to vector<16x32xf32>
    %208 = arith.addf %205, %207 : vector<16x32xf32>
    %c0_108 = arith.constant 0 : index
    %c0_109 = arith.constant 0 : index
    %209 = vector.load %arg30[%c0_108, %c0_109] : memref<64x64xf32, #tpu.memory_space<vmem>>, vector<64x64xf32>
    %cst_110 = arith.constant dense<0.000000e+00> : vector<16x64xf32>
    %210 = tpu.matmul %176, %209, %cst_110 {dimension_numbers = #tpu.dot_dimension_numbers<[1], [0], [0], [1], [0, 0, 1, 1], [], []>} : vector<16x64xf32>, vector<64x64xf32>, vector<16x64xf32> -> vector<16x64xf32>
    %c0_111 = arith.constant 0 : index
    %c0_112 = arith.constant 0 : index
    %211 = vector.load %arg31[%c0_111, %c0_112] : memref<1x64xf32, #tpu.memory_space<vmem>>, vector<1x64xf32>
    %212 = vector.broadcast %211 : vector<1x64xf32> to vector<16x64xf32>
    %213 = arith.addf %210, %212 : vector<16x64xf32>
    %214 = arith.mulf %213, %213 : vector<16x64xf32>
    %215 = arith.mulf %213, %214 : vector<16x64xf32>
    %cst_113 = arith.constant 4.471500e-02 : f32
    %216 = vector.broadcast %cst_113 : f32 to vector<16x64xf32>
    %217 = arith.mulf %216, %215 : vector<16x64xf32>
    %218 = arith.addf %213, %217 : vector<16x64xf32>
    %cst_114 = arith.constant 0.797884583 : f32
    %219 = vector.broadcast %cst_114 : f32 to vector<16x64xf32>
    %220 = arith.mulf %219, %218 : vector<16x64xf32>
    %221 = math.tanh %220 : vector<16x64xf32>
    %cst_115 = arith.constant 1.000000e+00 : f32
    %222 = vector.broadcast %cst_115 : f32 to vector<16x64xf32>
    %223 = arith.addf %222, %221 : vector<16x64xf32>
    %cst_116 = arith.constant 5.000000e-01 : f32
    %224 = vector.broadcast %cst_116 : f32 to vector<16x64xf32>
    %225 = arith.mulf %224, %223 : vector<16x64xf32>
    %226 = arith.mulf %213, %225 : vector<16x64xf32>
    %c0_117 = arith.constant 0 : index
    %c0_118 = arith.constant 0 : index
    %227 = vector.load %arg32[%c0_117, %c0_118] : memref<64x64xf32, #tpu.memory_space<vmem>>, vector<64x64xf32>
    %cst_119 = arith.constant dense<0.000000e+00> : vector<16x64xf32>
    %228 = tpu.matmul %226, %227, %cst_119 {dimension_numbers = #tpu.dot_dimension_numbers<[1], [0], [0], [1], [0, 0, 1, 1], [], []>} : vector<16x64xf32>, vector<64x64xf32>, vector<16x64xf32> -> vector<16x64xf32>
    %c0_120 = arith.constant 0 : index
    %c0_121 = arith.constant 0 : index
    %229 = vector.load %arg33[%c0_120, %c0_121] : memref<1x64xf32, #tpu.memory_space<vmem>>, vector<1x64xf32>
    %230 = vector.broadcast %229 : vector<1x64xf32> to vector<16x64xf32>
    %231 = arith.addf %228, %230 : vector<16x64xf32>
    %232 = arith.addf %176, %231 : vector<16x64xf32>
    %c0_122 = arith.constant 0 : index
    %c0_123 = arith.constant 0 : index
    %233 = vector.load %arg34[%c0_122, %c0_123] : memref<64x16xf32, #tpu.memory_space<vmem>>, vector<64x16xf32>
    %cst_124 = arith.constant dense<0.000000e+00> : vector<16x16xf32>
    %234 = tpu.matmul %232, %233, %cst_124 {dimension_numbers = #tpu.dot_dimension_numbers<[1], [0], [0], [1], [0, 0, 1, 1], [], []>} : vector<16x64xf32>, vector<64x16xf32>, vector<16x16xf32> -> vector<16x16xf32>
    %c0_125 = arith.constant 0 : index
    %c0_126 = arith.constant 0 : index
    %235 = vector.load %arg35[%c0_125, %c0_126] : memref<1x16xf32, #tpu.memory_space<vmem>>, vector<1x16xf32>
    %236 = vector.broadcast %235 : vector<1x16xf32> to vector<16x16xf32>
    %237 = arith.addf %234, %236 : vector<16x16xf32>
    %cst_127 = arith.constant 1.000000e+00 : f32
    %238 = vector.broadcast %cst_127 : f32 to vector<16x16xf32>
    %239 = arith.mulf %237, %238 : vector<16x16xf32>
    %cst_128 = arith.constant dense<0xFF800000> : vector<16xf32>
    %240 = vector.multi_reduction <maximumf>, %239, %cst_128 [1] : vector<16x16xf32> to vector<16xf32>
    %241 = vector.shape_cast %240 : vector<16xf32> to vector<16x1xf32>
    %242 = vector.broadcast %241 : vector<16x1xf32> to vector<16x16xf32>
    %243 = arith.subf %239, %242 : vector<16x16xf32>
    %244 = math.exp %243 : vector<16x16xf32>
    %cst_129 = arith.constant dense<0.000000e+00> : vector<16xf32>
    %245 = vector.multi_reduction <add>, %244, %cst_129 [1] : vector<16x16xf32> to vector<16xf32>
    %246 = vector.shape_cast %245 : vector<16xf32> to vector<16x1xf32>
    %247 = tpu.reciprocal %246 : vector<16x1xf32> -> vector<16x1xf32>
    %248 = vector.broadcast %247 : vector<16x1xf32> to vector<16x16xf32>
    %249 = arith.mulf %244, %248 : vector<16x16xf32>
    %cst_130 = arith.constant 0.000000e+00 : f32
    %250 = vector.broadcast %cst_130 : f32 to vector<16x80xf32>
    %251 = tpu.concatenate %208, %249, %250 in 1 : vector<16x32xf32>, vector<16x16xf32>, vector<16x80xf32> -> vector<16x128xf32>
    %c0_131 = arith.constant 0 : index
    %c0_132 = arith.constant 0 : index
    %252 = vector.load %arg36[%c0_131, %c0_132] : memref<16x128xf32, #tpu.memory_space<vmem>>, vector<16x128xf32>
    tpu.vector_store %arg36[%c0_131, %c0_132], %251 {strides = array<i32>} : memref<16x128xf32, #tpu.memory_space<vmem>>, vector<16x128xf32>,
    return
  }
}

</mosaic_0001>

<bundles_post_ra>
// kernel: tpu_custom_call.1
= control target key start
LH: loop header
LB: loop body
LE: loop exit
PB: predicated region body
PF: predicated region fallthrough
CT: control target
= control target key end

     0   :  { %s4389_s6 = smov 1   ;;  %s4390_s10 = smov 2   ;;  %s5130_s0 = inlined_call_operand.smem [shape: u32[38], index: -1, kind: input, shape index: {}] }
   0x1   :  { %s4463_s5 = sld [smem:[%s5130_s0]]   ;;  %s4391_s14 = smov 3  }
   0x2   :  { %s4468_s9 = sld [smem:[%s5130_s0 + %s4389_s6]]   ;;  %s4392_s18 = smov 4  }
   0x3   :  { %s4473_s13 = sld [smem:[%s5130_s0 + %s4390_s10]]   ;;  %s4393_s22 = smov 5  }
   0x4   :  { %s4478_s17 = sld [smem:[%s5130_s0 + %s4391_s14]]   ;;  %s4394_s26 = smov 6  }
   0x5   :  { %s4483_s21 = sld [smem:[%s5130_s0 + %s4392_s18]]   ;;  %s4395_s30 = smov 7  }
   0x6   :  { %s4488_s25 = sld [smem:[%s5130_s0 + %s4393_s22]]   ;;  %s4396_s4 = smov 8  }
   0x7   :  { %s4493_s29 = sld [smem:[%s5130_s0 + %s4394_s26]]   ;;  %s4397_s10 = smov 9  }
   0x8   :  { %s4498_s3 = sld [smem:[%s5130_s0 + %s4395_s30]]   ;;  %s4398_s15 = smov 10  }
   0x9   :  { %s4503_s8 = sld [smem:[%s5130_s0 + %s4396_s4]]   ;;  %s4399_s20 = smov 11  }
   0xa   :  { %5148 = sst [smem:[#allocation54_spill]] %s4478_s17  ;;  %s4400_s26 = smov 12  }
   0xb   :  { %s4508_s14 = sld [smem:[%s5130_s0 + %s4397_s10]]   ;;  %s4401_s1 = smov 13  }
   0xc   :  { %s4513_s19 = sld [smem:[%s5130_s0 + %s4398_s15]]   ;;  %s4402_s7 = smov 14  }
   0xd   :  { %s4518_s24 = sld [smem:[%s5130_s0 + %s4399_s20]]   ;;  %s4403_s15 = smov 15  }
   0xe   :  { %s4523_s30 = sld [smem:[%s5130_s0 + %s4400_s26]]   ;;  %s4404_s22 = smov 16  }
   0xf   :  { %s4528_s6 = sld [smem:[%s5130_s0 + %s4401_s1]]   ;;  %s4405_s28 = smov 17  }
  0x10   :  { %s4533_s12 = sld [smem:[%s5130_s0 + %s4402_s7]]   ;;  %s4406_s7 = smov 18  }
  0x11   :  { %5149 = sst [smem:[#allocation55_spill]] %s4508_s14 }
  0x12   :  { %5150 = sst [smem:[#allocation56_spill]] %s4513_s19 }
  0x13   :  { %s4538_s20 = sld [smem:[%s5130_s0 + %s4403_s15]]   ;;  %s4407_s15 = smov 19  }
  0x14   :  { %5151 = sst [smem:[#allocation57_spill]] %s4523_s30 }
  0x15   :  { %5152 = sst [smem:[#allocation58_spill]] %s4528_s6 }
  0x16   :  { %5153 = sst [smem:[#allocation59_spill]] %s4533_s12 }
  0x17   :  { %s4543_s27 = sld [smem:[%s5130_s0 + %s4404_s22]]   ;;  %s4408_s22 = smov 20  }
  0x18   :  { %s4548_s4 = sld [smem:[%s5130_s0 + %s4405_s28]]   ;;  %s4409_s28 = smov 21  }
  0x19   :  { %s4553_s12 = sld [smem:[%s5130_s0 + %s4406_s7]]   ;;  %s4410_s7 = smov 22  }
  0x1a   :  { %s4558_s30 = sld [smem:[%s5130_s0 + %s4407_s15]]   ;;  %s4411_s15 = smov 23  }
  0x1b   :  { %s4568_s19 = sld [smem:[%s5130_s0 + %s4409_s28]]   ;;  %s4413_s28 = smov 25  }
  0x1c   :  { %s4573_s17 = sld [smem:[%s5130_s0 + %s4410_s7]]   ;;  %s4414_s7 = smov 26  }
  0x1d   :  { %5154 = sst [smem:[#allocation60_spill]] %s4543_s27 }
  0x1e   :  { %5155 = sst [smem:[#allocation61_spill]] %s4548_s4 }
  0x1f   :  { %s4563_s27 = sld [smem:[%s5130_s0 + %s4408_s22]]   ;;  %s4412_s22 = smov 24  }
  0x20   :  { %5156 = sst [smem:[#allocation62_spill]] %s4558_s30 }
  0x21   :  { %s4578_s30 = sld [smem:[%s5130_s0 + %s4411_s15]]   ;;  %s4415_s15 = smov 27  }
  0x22   :  { %5158 = sst [smem:[#allocation64_spill]] %s4573_s17 }
  0x23   :  { %s4588_s4 = sld [smem:[%s5130_s0 + %s4413_s28]]   ;;  %s4417_s28 = smov 29  }
  0x24   :  { %s4593_s17 = sld [smem:[%s5130_s0 + %s4414_s7]]   ;;  %s4418_s7 = smov 30  }
  0x25   :  { %5157 = sst [smem:[#allocation63_spill]] %s4563_s27 }
  0x26   :  { %s4583_s27 = sld [smem:[%s5130_s0 + %s4412_s22]]   ;;  %s4416_s22 = smov 28  }
  0x27   :  { %5159 = sst [smem:[#allocation65_spill]] %s4578_s30 }
  0x28   :  { %s4598_s30 = sld [smem:[%s5130_s0 + %s4415_s15]]   ;;  %s4419_s15 = smov 31  }
  0x29   :  { %s4608_s6 = sld [smem:[%s5130_s0 + %s4417_s28]]   ;;  %s4421_s28 = smov 33  }
  0x2a   :  { %5161 = sst [smem:[#allocation67_spill]] %s4593_s17 }
  0x2b   :  { %s4613_s17 = sld [smem:[%s5130_s0 + %s4418_s7]]   ;;  %s4422_s7 = smov 34  }
  0x2c   :  { %5160 = sst [smem:[#allocation66_spill]] %s4583_s27 }
  0x2d   :  { %s4603_s27 = sld [smem:[%s5130_s0 + %s4416_s22]]   ;;  %s4420_s22 = smov 32  }
  0x2e   :  { %s4618_s14 = sld [smem:[%s5130_s0 + %s4419_s15]]   ;;  %s4423_s15 = smov 35  }
  0x2f   :  { %5163 = sst [smem:[#allocation69_spill]] %s4608_s6 }
  0x30   :  { %s4628_s6 = sld [smem:[%s5130_s0 + %s4421_s28]]   ;;  %s4425_s28 = smov 37  }
  0x31   :  { %5164 = sst [smem:[#allocation70_spill]] %s4613_s17 }
  0x32   :  { %s4633_s17 = sld [smem:[%s5130_s0 + %s4422_s7]]  }
  0x33   :  { %5162 = sst [smem:[#allocation68_spill]] %s4603_s27 }
  0x34   :  { %5165 = sst [smem:[#allocation71_spill]] %s4618_s14 }
  0x35   :  { %s4623_s27 = sld [smem:[%s5130_s0 + %s4420_s22]]   ;;  %s4424_s22 = smov 36  }
  0x36   :  { %5167 = sst [smem:[#allocation73_spill]] %s4628_s6 }
  0x37   :  { %s4638_s14 = sld [smem:[%s5130_s0 + %s4423_s15]]  }
  0x38   :  { %s4648_s6 = sld [smem:[%s5130_s0 + %s4425_s28]]  }
  0x3b   :  { %5166 = sst [smem:[#allocation72_spill]] %s4623_s27 }
  0x3c   :  { %s4643_s27 = sld [smem:[%s5130_s0 + %s4424_s22]]  }
  0x3d   :  { %81 = vsyncpa [#allocation3], 0 }
  0x3e   :  { %82 = vsyncpa [#allocation6], 0 }
  0x3f   :  { %83 = vsyncpa [#allocation9], 0 }
  0x40   :  { %84 = vsyncpa [#allocation12], 0 }
  0x41   :  { %85 = vsyncpa [#allocation15], 0 }
  0x42   :  { %86 = vsyncpa [#allocation18], 0 }
  0x43   :  { %87 = vsyncpa [#allocation21], 0 }
  0x44   :  { %88 = vsyncpa [#allocation24], 0 }
  0x45   :  { %89 = vsyncpa [#allocation27], 0 }
  0x46   :  { %90 = vsyncpa [#allocation30], 0 }
  0x47   :  { %91 = vsyncpa [#allocation33], 0 }
  0x48   :  { %92 = vsyncpa [#allocation36], 0 }
  0x49   :  { %93 = vsyncpa [#allocation4], 0 }
  0x4a   :  { %94 = vsyncpa [#allocation39], 0  ;;  %s4426_s7 = smov [#allocation5]   ;;  %s4427_s10 = smov [#allocation8]  }
  0x4b   :  { %s112_s0 = sshll.u32 %s4426_s7, 4  ;;  %s138_s11 = sshll.u32 %s4427_s10, 4  ;;  %s113_s0 = int_to_ptr.vmem [resolvable:$true] %s112_s0  ;;  %s4650_s11 = int_to_ptr.vmem [resolvable:$true] %s138_s11 }
  0x4c   :  { %s3833_s15 = scalar_lea.hbm %s4468_s9, 256 }
  0x4d   :  { %p3834_p0 = scmp.ne.s32.totalorder %s4468_s9, %s3833_s15  ;;  %p3837_p1 = scmp.lt.u32.totalorder %s3833_s15, %s4468_s9 }
  0x4f   :  { %p3839_p2 = pnand %p3837_p1, %p3834_p0 }
  0x51   :  { %3842 = shalt.err (!%p3839_p2)
}
  0x52   :  { %s3843_s16 = scalar_lea.vmem %s113_s0, 256  ;;  %p3848_p4 = scmp.lt.s32.totalorder %s113_s0, %s113_s0 }
  0x53   :  { %p3844_p3 = scmp.ne.s32.totalorder %s113_s0, %s3843_s16  ;;  %p3849_p5 = scmp.lt.s32.totalorder %s3843_s16, %s3843_s16 }
  0x55   :  { %p3850_p6 = por %p3849_p5, %p3848_p4 }
  0x57   :  { %p3851_p7 = pnand %p3850_p6, %p3844_p3 }
  0x59   :  { %3854 = shalt.err (!%p3851_p7)
}
  0x5a   :  { %s4428_s18 = smov 128   ;;  %s4429_s22 = smov 8  }
  0x5b   :  { %118 = dma.hbm_to_vmem [thread:$0]  %s4468_s9, 256, %s113_s0, [#allocation6], %s4428_s18, %s4428_s18, %s4429_s22  }
  0x5c   :  { %s3855_s23 = scalar_lea.hbm %s4483_s21, 512 }
  0x5d   :  { %p3856_p8 = scmp.ne.s32.totalorder %s4483_s21, %s3855_s23  ;;  %p3859_p9 = scmp.lt.u32.totalorder %s3855_s23, %s4483_s21 }
  0x5f   :  { %p3861_p10 = pnand %p3859_p9, %p3856_p8 }
  0x61   :  { %3864 = shalt.err (!%p3861_p10)
}
  0x62   :  { %s3865_s26 = scalar_lea.vmem %s4650_s11, 512  ;;  %p3870_p12 = scmp.lt.s32.totalorder %s4650_s11, %s4650_s11 }
  0x63   :  { %p3866_p11 = scmp.ne.s32.totalorder %s4650_s11, %s3865_s26  ;;  %p3871_p13 = scmp.lt.s32.totalorder %s3865_s26, %s3865_s26 }
  0x65   :  { %p3872_p0 = por %p3871_p13, %p3870_p12 }
  0x67   :  { %p3873_p1 = pnand %p3872_p0, %p3866_p11 }
  0x69   :  { %3876 = shalt.err (!%p3873_p1)
}
  0x6a   :  { %144 = dma.hbm_to_vmem [thread:$0]  %s4483_s21, 512, %s4650_s11, [#allocation9], %s4428_s18, %s4428_s18, %s4429_s22  }
  0x6b   :  { %s4430_s9 = smov [#allocation11]   ;;  %s4431_s1 = smov [#allocation14]  }
  0x6c   :  { %s160_s28 = sshll.u32 %s4430_s9, 4  ;;  %s183_s2 = sshll.u32 %s4431_s1, 4  ;;  %s161_s28 = int_to_ptr.vmem [resolvable:$true] %s160_s28  ;;  %s184_s2 = int_to_ptr.vmem [resolvable:$true] %s183_s2 }
  0x6d   :  { %s3877_s7 = scalar_lea.hbm %s4493_s29, 256 }
  0x6e   :  { %p3878_p2 = scmp.ne.s32.totalorder %s4493_s29, %s3877_s7  ;;  %p3881_p3 = scmp.lt.u32.totalorder %s3877_s7, %s4493_s29 }
  0x70   :  { %p3883_p4 = pnand %p3881_p3, %p3878_p2 }
  0x72   :  { %3886 = shalt.err (!%p3883_p4)
}
  0x73   :  { %s3887_s0 = scalar_lea.vmem %s161_s28, 256  ;;  %p3892_p6 = scmp.lt.s32.totalorder %s161_s28, %s161_s28 }
  0x74   :  { %p3888_p5 = scmp.ne.s32.totalorder %s161_s28, %s3887_s0  ;;  %p3893_p7 = scmp.lt.s32.totalorder %s3887_s0, %s3887_s0 }
  0x76   :  { %p3894_p8 = por %p3893_p7, %p3892_p6 }
  0x78   :  { %p3895_p9 = pnand %p3894_p8, %p3888_p5 }
  0x7a   :  { %3898 = shalt.err (!%p3895_p9)
}
  0x7b   :  { %166 = dma.hbm_to_vmem [thread:$0]  %s4493_s29, 256, %s161_s28, [#allocation12], %s4428_s18, %s4428_s18, %s4429_s22  }
  0x7c   :  { %s3899_s21 = scalar_lea.hbm %s4503_s8, 16 }
  0x7d   :  { %p3900_p10 = scmp.ne.s32.totalorder %s4503_s8, %s3899_s21  ;;  %p3903_p11 = scmp.lt.u32.totalorder %s3899_s21, %s4503_s8 }
  0x7f   :  { %p3905_p12 = pnand %p3903_p11, %p3900_p10 }
  0x81   :  { %3908 = shalt.err (!%p3905_p12)
}
  0x82   :  { %s3909_s10 = scalar_lea.vmem %s184_s2, 16  ;;  %s3913_s11 = scalar_lea.vmem %s184_s2, 32 }
  0x83   :  { %p3910_p13 = scmp.ne.s32.totalorder %s184_s2, %s3909_s10  ;;  %p3914_p0 = scmp.lt.s32.totalorder %s184_s2, %s184_s2 }
  0x84   :  { %p3915_p1 = scmp.lt.s32.totalorder %s3913_s11, %s3909_s10 }
  0x86   :  { %p3916_p2 = por %p3915_p1, %p3914_p0 }
  0x88   :  { %p3917_p3 = pnand %p3916_p2, %p3910_p13 }
  0x8a   :  { %3920 = shalt.err (!%p3917_p3)
}
  0x8b   :  { %186 = dma.hbm_to_vmem [thread:$0]  %s4503_s8, 16, %s184_s2, [#allocation15]  }
  0x8c   :  { %s4432_s15 = smov [#allocation17]   ;;  %s4433_s16 = smov [#allocation20]  }
  0x8d   :  { %s205_s29 = sshll.u32 %s4432_s15, 4  ;;  %s229_s23 = sshll.u32 %s4433_s16, 4  ;;  %s206_s29 = int_to_ptr.vmem [resolvable:$true] %s205_s29  ;;  %s230_s23 = int_to_ptr.vmem [resolvable:$true] %s229_s23 }
  0x8e   :  { %s3921_s26 = scalar_lea.hbm %s4518_s24, 16 }
  0x8f   :  { %p3922_p4 = scmp.ne.s32.totalorder %s4518_s24, %s3921_s26  ;;  %p3925_p5 = scmp.lt.u32.totalorder %s3921_s26, %s4518_s24 }
  0x91   :  { %p3927_p6 = pnand %p3925_p5, %p3922_p4 }
  0x93   :  { %3930 = shalt.err (!%p3927_p6)
}
  0x94   :  { %s3931_s9 = scalar_lea.vmem %s206_s29, 16  ;;  %s3935_s28 = scalar_lea.vmem %s206_s29, 32 }
  0x95   :  { %p3932_p7 = scmp.ne.s32.totalorder %s206_s29, %s3931_s9  ;;  %p3936_p8 = scmp.lt.s32.totalorder %s206_s29, %s206_s29 }
  0x96   :  { %p3937_p9 = scmp.lt.s32.totalorder %s3935_s28, %s3931_s9 }
  0x98   :  { %p3938_p10 = por %p3937_p9, %p3936_p8 }
  0x9a   :  { %p3939_p11 = pnand %p3938_p10, %p3932_p7 }
  0x9c   :  { %3942 = shalt.err (!%p3939_p11)
}
  0x9d   :  { %208 = dma.hbm_to_vmem [thread:$0]  %s4518_s24, 16, %s206_s29, [#allocation18]  }
  0x9e   :  { %s3943_s8 = scalar_lea.hbm %s4538_s20, 16 }
  0x9f   :  { %p3944_p12 = scmp.ne.s32.totalorder %s4538_s20, %s3943_s8  ;;  %p3947_p13 = scmp.lt.u32.totalorder %s3943_s8, %s4538_s20 }
  0xa1   :  { %p3949_p0 = pnand %p3947_p13, %p3944_p12 }
  0xa3   :  { %3952 = shalt.err (!%p3949_p0)
}
  0xa4   :  { %s3953_s1 = scalar_lea.vmem %s230_s23, 16  ;;  %s3957_s2 = scalar_lea.vmem %s230_s23, 32 }
  0xa5   :  { %p3954_p1 = scmp.ne.s32.totalorder %s230_s23, %s3953_s1  ;;  %p3958_p2 = scmp.lt.s32.totalorder %s230_s23, %s230_s23 }
  0xa6   :  { %p3959_p3 = scmp.lt.s32.totalorder %s3957_s2, %s3953_s1 }
  0xa8   :  { %p3960_p4 = por %p3959_p3, %p3958_p2 }
  0xaa   :  { %p3961_p5 = pnand %p3960_p4, %p3954_p1 }
  0xac   :  { %3964 = shalt.err (!%p3961_p5)
}
  0xad   :  { %232 = dma.hbm_to_vmem [thread:$0]  %s4538_s20, 16, %s230_s23, [#allocation21]  }
  0xae   :  { %s4434_s7 = smov [#allocation23]   ;;  %s4435_s0 = smov [#allocation26]  }
  0xaf   :  { %s251_s24 = sshll.u32 %s4434_s7, 4  ;;  %s273_s21 = sshll.u32 %s4435_s0, 4  ;;  %s252_s24 = int_to_ptr.vmem [resolvable:$true] %s251_s24  ;;  %s274_s21 = int_to_ptr.vmem [resolvable:$true] %s273_s21 }
  0xb0   :  { %s3965_s10 = scalar_lea.hbm %s4553_s12, 16 }
  0xb1   :  { %p3966_p6 = scmp.ne.s32.totalorder %s4553_s12, %s3965_s10  ;;  %p3969_p7 = scmp.lt.u32.totalorder %s3965_s10, %s4553_s12 }
  0xb3   :  { %p3971_p8 = pnand %p3969_p7, %p3966_p6 }
  0xb5   :  { %3974 = shalt.err (!%p3971_p8)
}
  0xb6   :  { %s3975_s11 = scalar_lea.vmem %s252_s24, 16  ;;  %s3979_s15 = scalar_lea.vmem %s252_s24, 32 }
  0xb7   :  { %p3976_p9 = scmp.ne.s32.totalorder %s252_s24, %s3975_s11  ;;  %p3980_p10 = scmp.lt.s32.totalorder %s252_s24, %s252_s24 }
  0xb8   :  { %p3981_p11 = scmp.lt.s32.totalorder %s3979_s15, %s3975_s11 }
  0xba   :  { %p3982_p12 = por %p3981_p11, %p3980_p10 }
  0xbc   :  { %p3983_p13 = pnand %p3982_p12, %p3976_p9 }
  0xbe   :  { %3986 = shalt.err (!%p3983_p13)
}
  0xbf   :  { %254 = dma.hbm_to_vmem [thread:$0]  %s4553_s12, 16, %s252_s24, [#allocation24]  }
  0xc0   :  { %s3987_s20 = scalar_lea.hbm %s4568_s19, 16 }
  0xc1   :  { %p3988_p0 = scmp.ne.s32.totalorder %s4568_s19, %s3987_s20  ;;  %p3991_p1 = scmp.lt.u32.totalorder %s3987_s20, %s4568_s19 }
  0xc3   :  { %p3993_p2 = pnand %p3991_p1, %p3988_p0 }
  0xc5   :  { %3996 = shalt.err (!%p3993_p2)
}
  0xc6   :  { %s3997_s29 = scalar_lea.vmem %s274_s21, 16  ;;  %s4001_s16 = scalar_lea.vmem %s274_s21, 32 }
  0xc7   :  { %p3998_p3 = scmp.ne.s32.totalorder %s274_s21, %s3997_s29  ;;  %p4002_p4 = scmp.lt.s32.totalorder %s274_s21, %s274_s21 }
  0xc8   :  { %p4003_p5 = scmp.lt.s32.totalorder %s4001_s16, %s3997_s29 }
  0xca   :  { %p4004_p6 = por %p4003_p5, %p4002_p4 }
  0xcc   :  { %p4005_p7 = pnand %p4004_p6, %p3998_p3 }
  0xce   :  { %4008 = shalt.err (!%p4005_p7)
}
  0xcf   :  { %276 = dma.hbm_to_vmem [thread:$0]  %s4568_s19, 16, %s274_s21, [#allocation27]  }
  0xd0   :  { %s4436_s23 = smov [#allocation29]   ;;  %s4437_s26 = smov [#allocation32]  }
  0xd1   :  { %s297_s12 = sshll.u32 %s4436_s23, 4  ;;  %s319_s9 = sshll.u32 %s4437_s26, 4  ;;  %s298_s12 = int_to_ptr.vmem [resolvable:$true] %s297_s12  ;;  %s320_s9 = int_to_ptr.vmem [resolvable:$true] %s319_s9 }
  0xd2   :  { %s4009_s28 = scalar_lea.hbm %s4588_s4, 16 }
  0xd3   :  { %p4010_p8 = scmp.ne.s32.totalorder %s4588_s4, %s4009_s28  ;;  %p4013_p9 = scmp.lt.u32.totalorder %s4009_s28, %s4588_s4 }
  0xd5   :  { %p4015_p10 = pnand %p4013_p9, %p4010_p8 }
  0xd7   :  { %4018 = shalt.err (!%p4015_p10)
}
  0xd8   :  { %s4019_s8 = scalar_lea.vmem %s298_s12, 16  ;;  %s4023_s1 = scalar_lea.vmem %s298_s12, 32 }
  0xd9   :  { %p4020_p11 = scmp.ne.s32.totalorder %s298_s12, %s4019_s8  ;;  %p4024_p12 = scmp.lt.s32.totalorder %s298_s12, %s298_s12 }
  0xda   :  { %p4025_p13 = scmp.lt.s32.totalorder %s4023_s1, %s4019_s8 }
  0xdc   :  { %p4026_p0 = por %p4025_p13, %p4024_p12 }
  0xde   :  { %p4027_p1 = pnand %p4026_p0, %p4020_p11 }
  0xe0   :  { %4030 = shalt.err (!%p4027_p1)
}
  0xe1   :  { %300 = dma.hbm_to_vmem [thread:$0]  %s4588_s4, 16, %s298_s12, [#allocation30]  }
  0xe2   :  { %s4031_s19 = scalar_lea.hbm %s4598_s30, 16 }
  0xe3   :  { %p4032_p2 = scmp.ne.s32.totalorder %s4598_s30, %s4031_s19  ;;  %p4035_p3 = scmp.lt.u32.totalorder %s4031_s19, %s4598_s30 }
  0xe5   :  { %p4037_p4 = pnand %p4035_p3, %p4032_p2 }
  0xe7   :  { %4040 = shalt.err (!%p4037_p4)
}
  0xe8   :  { %s4041_s2 = scalar_lea.vmem %s320_s9, 16  ;;  %s4045_s7 = scalar_lea.vmem %s320_s9, 32 }
  0xe9   :  { %p4042_p5 = scmp.ne.s32.totalorder %s320_s9, %s4041_s2  ;;  %p4046_p6 = scmp.lt.s32.totalorder %s320_s9, %s320_s9 }
  0xea   :  { %p4047_p7 = scmp.lt.s32.totalorder %s4045_s7, %s4041_s2 }
  0xec   :  { %p4048_p8 = por %p4047_p7, %p4046_p6 }
  0xee   :  { %p4049_p9 = pnand %p4048_p8, %p4042_p5 }
  0xf0   :  { %4052 = shalt.err (!%p4049_p9)
}
  0xf1   :  { %322 = dma.hbm_to_vmem [thread:$0]  %s4598_s30, 16, %s320_s9, [#allocation33]  }
  0xf2   :  { %s4438_s24 = smov [#allocation2]   ;;  %s4439_s0 = smov [#allocation7]  }
  0xf3   :  { %s100_s4 = sshll.u32 %s4438_s24, 4  ;;  %s124_s21 = sshll.u32 %s4439_s0, 4  ;;  %s101_s4 = int_to_ptr.vmem [resolvable:$true] %s100_s4  ;;  %s4706_s21 = int_to_ptr.vmem [resolvable:$true] %s124_s21 }
  0xf4   :  { %s4053_s10 = scalar_lea.hbm %s4463_s5, 256 }
  0xf5   :  { %p4054_p10 = scmp.ne.s32.totalorder %s4463_s5, %s4053_s10  ;;  %p4057_p11 = scmp.lt.u32.totalorder %s4053_s10, %s4463_s5 }
  0xf7   :  { %p4059_p12 = pnand %p4057_p11, %p4054_p10 }
  0xf9   :  { %4062 = shalt.err (!%p4059_p12)
}
  0xfa   :  { %s4063_s11 = scalar_lea.vmem %s101_s4, 256  ;;  %p4068_p0 = scmp.lt.s32.totalorder %s101_s4, %s101_s4 }
  0xfb   :  { %p4064_p13 = scmp.ne.s32.totalorder %s101_s4, %s4063_s11  ;;  %p4069_p1 = scmp.lt.s32.totalorder %s4063_s11, %s4063_s11 }
  0xfd   :  { %p4070_p2 = por %p4069_p1, %p4068_p0 }
  0xff   :  { %p4071_p3 = pnand %p4070_p2, %p4064_p13 }
 0x101   :  { %4074 = shalt.err (!%p4071_p3)
}
 0x102   :  { %106 = dma.hbm_to_vmem [thread:$0]  %s4463_s5, 256, %s101_s4, [#allocation3], %s4428_s18, %s4428_s18, %s4429_s22  }
 0x103   :  { %s4075_s30 = scalar_lea.hbm %s4473_s13, 512 }
 0x104   :  { %p4076_p4 = scmp.ne.s32.totalorder %s4473_s13, %s4075_s30  ;;  %p4079_p5 = scmp.lt.u32.totalorder %s4075_s30, %s4473_s13 }
 0x106   :  { %p4081_p6 = pnand %p4079_p5, %p4076_p4 }
 0x108   :  { %4084 = shalt.err (!%p4081_p6)
}
 0x109   :  { %s4085_s15 = scalar_lea.vmem %s4706_s21, 512  ;;  %p4090_p8 = scmp.lt.s32.totalorder %s4706_s21, %s4706_s21 }
 0x10a   :  { %p4086_p7 = scmp.ne.s32.totalorder %s4706_s21, %s4085_s15  ;;  %p4091_p9 = scmp.lt.s32.totalorder %s4085_s15, %s4085_s15 }
 0x10c   :  { %p4092_p10 = por %p4091_p9, %p4090_p8 }
 0x10e   :  { %p4093_p11 = pnand %p4092_p10, %p4086_p7 }
 0x110   :  { %4096 = shalt.err (!%p4093_p11)
}
 0x111   :  { %130 = dma.hbm_to_vmem [thread:$0]  %s4473_s13, 512, %s4706_s21, [#allocation6], %s4428_s18, %s4428_s18, %s4429_s22  }
 0x112   :  { %s4440_s5 = smov [#allocation10]   ;;  %s4441_s29 = smov [#allocation13]  }
 0x113   :  { %s151_s20 = sshll.u32 %s4440_s5, 4  ;;  %s173_s16 = sshll.u32 %s4441_s29, 4  ;;  %s152_s20 = int_to_ptr.vmem [resolvable:$true] %s151_s20  ;;  %s174_s16 = int_to_ptr.vmem [resolvable:$true] %s173_s16 }
 0x114   :  { %s4097_s23 = scalar_lea.hbm %s4488_s25, 16 }
 0x115   :  { %p4098_p12 = scmp.ne.s32.totalorder %s4488_s25, %s4097_s23  ;;  %p4101_p13 = scmp.lt.u32.totalorder %s4097_s23, %s4488_s25 }
 0x117   :  { %p4103_p0 = pnand %p4101_p13, %p4098_p12 }
 0x119   :  { %4106 = shalt.err (!%p4103_p0)
}
 0x11a   :  { %s4107_s12 = scalar_lea.vmem %s152_s20, 16  ;;  %s4111_s26 = scalar_lea.vmem %s152_s20, 32 }
 0x11b   :  { %p4108_p1 = scmp.ne.s32.totalorder %s152_s20, %s4107_s12  ;;  %p4112_p2 = scmp.lt.s32.totalorder %s152_s20, %s152_s20 }
 0x11c   :  { %p4113_p3 = scmp.lt.s32.totalorder %s4111_s26, %s4107_s12 }
 0x11e   :  { %p4114_p4 = por %p4113_p3, %p4112_p2 }
 0x120   :  { %p4115_p5 = pnand %p4114_p4, %p4108_p1 }
 0x122   :  { %4118 = shalt.err (!%p4115_p5)
}
 0x123   :  { %154 = dma.hbm_to_vmem [thread:$0]  %s4488_s25, 16, %s152_s20, [#allocation9]  }
 0x124   :  { %s4119_s13 = scalar_lea.hbm %s4498_s3, 16 }
 0x125   :  { %p4120_p6 = scmp.ne.s32.totalorder %s4498_s3, %s4119_s13  ;;  %p4123_p7 = scmp.lt.u32.totalorder %s4119_s13, %s4498_s3 }
 0x127   :  { %p4125_p8 = pnand %p4123_p7, %p4120_p6 }
 0x129   :  { %4128 = shalt.err (!%p4125_p8)
}
 0x12a   :  { %s4129_s9 = scalar_lea.vmem %s174_s16, 16  ;;  %s4133_s28 = scalar_lea.vmem %s174_s16, 32 }
 0x12b   :  { %p4130_p9 = scmp.ne.s32.totalorder %s174_s16, %s4129_s9  ;;  %p4134_p10 = scmp.lt.s32.totalorder %s174_s16, %s174_s16 }
 0x12c   :  { %p4135_p11 = scmp.lt.s32.totalorder %s4133_s28, %s4129_s9 }
 0x12e   :  { %p4136_p12 = por %p4135_p11, %p4134_p10 }
 0x130   :  { %p4137_p13 = pnand %p4136_p12, %p4130_p9 }
 0x132   :  { %4140 = shalt.err (!%p4137_p13)
}
 0x133   :  { %s5168_s8 = sld [smem:[#allocation55_spill]]  ;;  %s4442_s1 = smov [#allocation16]  }
 0x134   :  { %176 = dma.hbm_to_vmem [thread:$0]  %s4498_s3, 16, %s174_s16, [#allocation12]  }
 0x135   :  { %s193_s25 = sshll.u32 %s4442_s1, 4  ;;  %s4443_s19 = smov [#allocation19]   ;;  %s194_s25 = int_to_ptr.vmem [resolvable:$true] %s193_s25 }
 0x136   :  { %s217_s2 = sshll.u32 %s4443_s19, 4  ;;  %s218_s2 = int_to_ptr.vmem [resolvable:$true] %s217_s2 }
 0x139   :  { %s4141_s7 = scalar_lea.hbm %s5168_s8, 16 }
 0x13a   :  { %p4142_p0 = scmp.ne.s32.totalorder %s5168_s8, %s4141_s7  ;;  %p4145_p1 = scmp.lt.u32.totalorder %s4141_s7, %s5168_s8 }
 0x13c   :  { %p4147_p2 = pnand %p4145_p1, %p4142_p0 }
 0x13e   :  { %4150 = shalt.err (!%p4147_p2)
}
 0x13f   :  { %s4151_s24 = scalar_lea.vmem %s194_s25, 16  ;;  %s4155_s4 = scalar_lea.vmem %s194_s25, 32 }
 0x140   :  { %p4152_p3 = scmp.ne.s32.totalorder %s194_s25, %s4151_s24  ;;  %p4156_p4 = scmp.lt.s32.totalorder %s194_s25, %s194_s25 }
 0x141   :  { %p4157_p5 = scmp.lt.s32.totalorder %s4155_s4, %s4151_s24 }
 0x143   :  { %p4158_p6 = por %p4157_p5, %p4156_p4 }
 0x145   :  { %p4159_p7 = pnand %p4158_p6, %p4152_p3 }
 0x147   :  { %4162 = shalt.err (!%p4159_p7)
}
 0x148   :  { %s5169_s3 = sld [smem:[#allocation58_spill]] }
 0x149   :  { %196 = dma.hbm_to_vmem [thread:$0]  %s5168_s8, 16, %s194_s25, [#allocation15]  }
 0x14e   :  { %s4163_s0 = scalar_lea.hbm %s5169_s3, 16 }
 0x14f   :  { %p4164_p8 = scmp.ne.s32.totalorder %s5169_s3, %s4163_s0  ;;  %p4167_p9 = scmp.lt.u32.totalorder %s4163_s0, %s5169_s3 }
 0x151   :  { %p4169_p10 = pnand %p4167_p9, %p4164_p8 }
 0x153   :  { %4172 = shalt.err (!%p4169_p10)
}
 0x154   :  { %s4173_s21 = scalar_lea.vmem %s218_s2, 16  ;;  %s4177_s10 = scalar_lea.vmem %s218_s2, 32 }
 0x155   :  { %p4174_p11 = scmp.ne.s32.totalorder %s218_s2, %s4173_s21  ;;  %p4178_p12 = scmp.lt.s32.totalorder %s218_s2, %s218_s2 }
 0x156   :  { %p4179_p13 = scmp.lt.s32.totalorder %s4177_s10, %s4173_s21 }
 0x158   :  { %p4180_p0 = por %p4179_p13, %p4178_p12 }
 0x15a   :  { %p4181_p1 = pnand %p4180_p0, %p4174_p11 }
 0x15c   :  { %4184 = shalt.err (!%p4181_p1)
}
 0x15d   :  { %s5170_s11 = sld [smem:[#allocation61_spill]]  ;;  %s4444_s30 = smov [#allocation22]  }
 0x15e   :  { %220 = dma.hbm_to_vmem [thread:$0]  %s5169_s3, 16, %s218_s2, [#allocation18]  }
 0x15f   :  { %s241_s15 = sshll.u32 %s4444_s30, 4  ;;  %s4445_s5 = smov [#allocation25]   ;;  %s242_s15 = int_to_ptr.vmem [resolvable:$true] %s241_s15 }
 0x160   :  { %s261_s20 = sshll.u32 %s4445_s5, 4  ;;  %s262_s20 = int_to_ptr.vmem [resolvable:$true] %s261_s20 }
 0x163   :  { %s4185_s29 = scalar_lea.hbm %s5170_s11, 16 }
 0x164   :  { %p4186_p2 = scmp.ne.s32.totalorder %s5170_s11, %s4185_s29  ;;  %p4189_p3 = scmp.lt.u32.totalorder %s4185_s29, %s5170_s11 }
 0x166   :  { %p4191_p4 = pnand %p4189_p3, %p4186_p2 }
 0x168   :  { %4194 = shalt.err (!%p4191_p4)
}
 0x169   :  { %s4195_s16 = scalar_lea.vmem %s242_s15, 16  ;;  %s4199_s23 = scalar_lea.vmem %s242_s15, 32 }
 0x16a   :  { %p4196_p5 = scmp.ne.s32.totalorder %s242_s15, %s4195_s16  ;;  %p4200_p6 = scmp.lt.s32.totalorder %s242_s15, %s242_s15 }
 0x16b   :  { %p4201_p7 = scmp.lt.s32.totalorder %s4199_s23, %s4195_s16 }
 0x16d   :  { %p4202_p8 = por %p4201_p7, %p4200_p6 }
 0x16f   :  { %p4203_p9 = pnand %p4202_p8, %p4196_p5 }
 0x171   :  { %4206 = shalt.err (!%p4203_p9)
}
 0x172   :  { %s5171_s12 = sld [smem:[#allocation62_spill]] }
 0x173   :  { %244 = dma.hbm_to_vmem [thread:$0]  %s5170_s11, 16, %s242_s15, [#allocation21]  }
 0x178   :  { %s4207_s26 = scalar_lea.hbm %s5171_s12, 16 }
 0x179   :  { %p4208_p10 = scmp.ne.s32.totalorder %s5171_s12, %s4207_s26  ;;  %p4211_p11 = scmp.lt.u32.totalorder %s4207_s26, %s5171_s12 }
 0x17b   :  { %p4213_p12 = pnand %p4211_p11, %p4208_p10 }
 0x17d   :  { %4216 = shalt.err (!%p4213_p12)
}
 0x17e   :  { %s4217_s13 = scalar_lea.vmem %s262_s20, 16  ;;  %s4221_s9 = scalar_lea.vmem %s262_s20, 32 }
 0x17f   :  { %p4218_p13 = scmp.ne.s32.totalorder %s262_s20, %s4217_s13  ;;  %p4222_p0 = scmp.lt.s32.totalorder %s262_s20, %s262_s20 }
 0x180   :  { %p4223_p1 = scmp.lt.s32.totalorder %s4221_s9, %s4217_s13 }
 0x182   :  { %p4224_p2 = por %p4223_p1, %p4222_p0 }
 0x184   :  { %p4225_p3 = pnand %p4224_p2, %p4218_p13 }
 0x186   :  { %4228 = shalt.err (!%p4225_p3)
}
 0x187   :  { %s5172_s28 = sld [smem:[#allocation65_spill]]  ;;  %s4446_s8 = smov [#allocation28]  }
 0x188   :  { %264 = dma.hbm_to_vmem [thread:$0]  %s5171_s12, 16, %s262_s20, [#allocation24]  }
 0x189   :  { %s285_s1 = sshll.u32 %s4446_s8, 4  ;;  %s4447_s25 = smov [#allocation31]   ;;  %s286_s1 = int_to_ptr.vmem [resolvable:$true] %s285_s1 }
 0x18a   :  { %s306_s19 = sshll.u32 %s4447_s25, 4  ;;  %s4751_s19 = int_to_ptr.vmem [resolvable:$true] %s306_s19 }
 0x18d   :  { %s4229_s2 = scalar_lea.hbm %s5172_s28, 16 }
 0x18e   :  { %p4230_p4 = scmp.ne.s32.totalorder %s5172_s28, %s4229_s2  ;;  %p4233_p5 = scmp.lt.u32.totalorder %s4229_s2, %s5172_s28 }
 0x190   :  { %p4235_p6 = pnand %p4233_p5, %p4230_p4 }
 0x192   :  { %4238 = shalt.err (!%p4235_p6)
}
 0x193   :  { %s4239_s7 = scalar_lea.vmem %s286_s1, 16  ;;  %s4243_s24 = scalar_lea.vmem %s286_s1, 32 }
 0x194   :  { %p4240_p7 = scmp.ne.s32.totalorder %s286_s1, %s4239_s7  ;;  %p4244_p8 = scmp.lt.s32.totalorder %s286_s1, %s286_s1 }
 0x195   :  { %p4245_p9 = scmp.lt.s32.totalorder %s4243_s24, %s4239_s7 }
 0x197   :  { %p4246_p10 = por %p4245_p9, %p4244_p8 }
 0x199   :  { %p4247_p11 = pnand %p4246_p10, %p4240_p7 }
 0x19b   :  { %4250 = shalt.err (!%p4247_p11)
}
 0x19c   :  { %s5173_s4 = sld [smem:[#allocation67_spill]] }
 0x19d   :  { %288 = dma.hbm_to_vmem [thread:$0]  %s5172_s28, 16, %s286_s1, [#allocation27]  }
 0x1a2   :  { %s4251_s3 = scalar_lea.hbm %s5173_s4, 1024 }
 0x1a3   :  { %p4252_p12 = scmp.ne.s32.totalorder %s5173_s4, %s4251_s3  ;;  %p4255_p13 = scmp.lt.u32.totalorder %s4251_s3, %s5173_s4 }
 0x1a5   :  { %p4257_p0 = pnand %p4255_p13, %p4252_p12 }
 0x1a7   :  { %4260 = shalt.err (!%p4257_p0)
}
 0x1a8   :  { %s4261_s0 = scalar_lea.vmem %s4751_s19, 1024  ;;  %p4266_p2 = scmp.lt.s32.totalorder %s4751_s19, %s4751_s19 }
 0x1a9   :  { %p4262_p1 = scmp.ne.s32.totalorder %s4751_s19, %s4261_s0  ;;  %p4267_p3 = scmp.lt.s32.totalorder %s4261_s0, %s4261_s0 }
 0x1ab   :  { %p4268_p4 = por %p4267_p3, %p4266_p2 }
 0x1ad   :  { %p4269_p5 = pnand %p4268_p4, %p4262_p1 }
 0x1af   :  { %4272 = shalt.err (!%p4269_p5)
}
 0x1b0   :  { %s5174_s21 = sld [smem:[#allocation70_spill]]  ;;  %s4448_s10 = smov [#allocation34]  }
 0x1b1   :  { %312 = dma.hbm_to_vmem [thread:$0]  %s5173_s4, 1024, %s4751_s19, [#allocation30], %s4428_s18, %s4428_s18, %s4429_s22  }
 0x1b2   :  { %s332_s11 = sshll.u32 %s4448_s10, 4  ;;  %s4449_s30 = smov [#allocation35]   ;;  %s333_s11 = int_to_ptr.vmem [resolvable:$true] %s332_s11 }
 0x1b3   :  { %s346_s15 = sshll.u32 %s4449_s30, 4  ;;  %s4769_s15 = int_to_ptr.vmem [resolvable:$true] %s346_s15 }
 0x1b6   :  { %s4273_s5 = scalar_lea.hbm %s5174_s21, 1024 }
 0x1b7   :  { %p4274_p6 = scmp.ne.s32.totalorder %s5174_s21, %s4273_s5  ;;  %p4277_p7 = scmp.lt.u32.totalorder %s4273_s5, %s5174_s21 }
 0x1b9   :  { %p4279_p8 = pnand %p4277_p7, %p4274_p6 }
 0x1bb   :  { %4282 = shalt.err (!%p4279_p8)
}
 0x1bc   :  { %s4283_s20 = scalar_lea.vmem %s333_s11, 1024  ;;  %p4288_p10 = scmp.lt.s32.totalorder %s333_s11, %s333_s11 }
 0x1bd   :  { %p4284_p9 = scmp.ne.s32.totalorder %s333_s11, %s4283_s20  ;;  %p4289_p11 = scmp.lt.s32.totalorder %s4283_s20, %s4283_s20 }
 0x1bf   :  { %p4290_p12 = por %p4289_p11, %p4288_p10 }
 0x1c1   :  { %p4291_p13 = pnand %p4290_p12, %p4284_p9 }
 0x1c3   :  { %4294 = shalt.err (!%p4291_p13)
}
 0x1c4   :  { %s5175_s29 = sld [smem:[#allocation72_spill]] }
 0x1c5   :  { %338 = dma.hbm_to_vmem [thread:$0]  %s5174_s21, 1024, %s333_s11, [#allocation33], %s4428_s18, %s4428_s18, %s4429_s22  }
 0x1ca   :  { %s4295_s16 = scalar_lea.hbm %s5175_s29, 1024 }
 0x1cb   :  { %p4296_p0 = scmp.ne.s32.totalorder %s5175_s29, %s4295_s16  ;;  %p4299_p1 = scmp.lt.u32.totalorder %s4295_s16, %s5175_s29 }
 0x1cd   :  { %p4301_p2 = pnand %p4299_p1, %p4296_p0 }
 0x1cf   :  { %4304 = shalt.err (!%p4301_p2)
}
 0x1d0   :  { %s4305_s23 = scalar_lea.vmem %s4769_s15, 1024  ;;  %p4310_p4 = scmp.lt.s32.totalorder %s4769_s15, %s4769_s15 }
 0x1d1   :  { %p4306_p3 = scmp.ne.s32.totalorder %s4769_s15, %s4305_s23  ;;  %p4311_p5 = scmp.lt.s32.totalorder %s4305_s23, %s4305_s23 }
 0x1d3   :  { %p4312_p6 = por %p4311_p5, %p4310_p4 }
 0x1d5   :  { %p4313_p7 = pnand %p4312_p6, %p4306_p3 }
 0x1d7   :  { %4316 = shalt.err (!%p4313_p7)
}
 0x1d8   :  { %352 = dma.hbm_to_vmem [thread:$0]  %s5175_s29, 1024, %s4769_s15, [#allocation36], %s4428_s18, %s4428_s18, %s4429_s22  }
 0x1d9   :  { %4361 = dma.done.wait [#allocation3], 256  }
 0x1da   :  { %4362 = vsyncadd [#allocation3], 4294967040 }
 0x1db   :  { %4363 = dma.done.wait [#allocation6], 768  }
 0x1dc   :  { %4364 = vsyncadd [#allocation6], 4294966528 }
 0x1dd   :  { %4365 = dma.done.wait [#allocation9], 528  }
 0x1de   :  { %4366 = vsyncadd [#allocation9], 4294966768 }
 0x1df   :  { %4367 = dma.done.wait [#allocation12], 272  }
 0x1e0   :  { %4368 = vsyncadd [#allocation12], 4294967024 }
 0x1e1   :  { %4369 = dma.done.wait [#allocation15], 32  }
 0x1e2   :  { %4370 = vsyncadd [#allocation15], 4294967264 }
 0x1e3   :  { %4371 = dma.done.wait [#allocation18], 32  }
 0x1e4   :  { %4372 = vsyncadd [#allocation18], 4294967264 }
 0x1e5   :  { %4373 = dma.done.wait [#allocation21], 32  }
 0x1e6   :  { %4374 = vsyncadd [#allocation21], 4294967264 }
 0x1e7   :  { %4375 = dma.done.wait [#allocation24], 32  }
 0x1e8   :  { %4376 = vsyncadd [#allocation24], 4294967264 }
 0x1e9   :  { %4377 = dma.done.wait [#allocation27], 32  }
 0x1ea   :  { %4378 = vsyncadd [#allocation27], 4294967264 }
 0x1eb   :  { %4379 = dma.done.wait [#allocation30], 1040  }
 0x1ec   :  { %4380 = vsyncadd [#allocation30], 4294966256 }
 0x1ed   :  { %4381 = dma.done.wait [#allocation33], 1040  }
 0x1ee   :  { %4382 = vsyncadd [#allocation33], 4294966256 }
 0x1ef   :  { %4383 = dma.done.wait [#allocation36], 1024  }
 0x1f0   :  { %4384 = vsyncadd [#allocation36], 4294966272  ;;  %vm556_vm0 = vcmask 130048   ;;  %v427_v0 = vld [vmem:[#allocation8] sm:$0xff]  ;;  %v428_v1 = vld [vmem:[#allocation8 + $0x8] sm:$0xff]  ;;  %vm438_vm1 = vcmask 261120  }
 0x1f1   :  { %v547_v2 = vld [vmem:[#allocation11] sm:$0xff]  ;;  %v3407_v3 = vpack.c.bf16 %v428_v1, %v427_v0  ;;  %v548_v4 = vld [vmem:[#allocation11 + $0x8] sm:$0xff]  ;;  %v430_v8 = vld [vmem:[#allocation8 + $0x18] sm:$0xff]  ;;  %s5176_s12 = sld [smem:[#allocation54_spill]]  ;;  %vm663_vm2 = vcmask 523264   ;;  %s5177_s26 = sld [smem:[#allocation56_spill]] }
 0x1f2   :  { %v545_v5 = vld [vmem:[#allocation5] sm:$0xff]  ;;  %v3415_v7 = vpack.c.bf16 %v548_v4, %v547_v2  ;;  %v425_v9 = vld [vmem:[#allocation2] sm:$0xff]  ;;  %v546_v11 = vld [vmem:[#allocation5 + $0x8] sm:$0xff]  ;;  %s5178_s13 = sld [smem:[#allocation57_spill]]  ;;  %s5179_s9 = sld [smem:[#allocation59_spill]]  ;;  %vm2723_vm4 = vcmask 392192  }
 0x1f3   :  { %v429_v6 = vld [vmem:[#allocation8 + $0x10] sm:$0xff]  ;;  %3086 = vmatprep.mubr.msk.f32.mxu1 %vm556_vm0, %v545_v5  ;;  %3408 = vmatprep.subr.bf16.mxu0 %v3407_v3  ;;  %v426_v12 = vld [vmem:[#allocation2 + $0x8] sm:$0xff]  ;;  %v2809_v17 = vld [vmem:[#allocation10] ss:$0 sm:$0xff]  ;;  %s4450_s28 = smov 96   ;;  %s5182_s8 = sld [smem:[#allocation60_spill]] }
 0x1f4   :  { %v3411_v10 = vpack.c.bf16 %v430_v8, %v429_v6  ;;  %3079 = vmatprep.mubr.msk.f32.mxu0 %vm438_vm1, %v425_v9  ;;  %3416 = vmatprep.subr.bf16.mxu1 %v3415_v7  ;;  %v2813_v13 = vld [vmem:[#allocation13] ss:$0 sm:$0xff]  ;;  %vm4878_vm3 = vmpackc.low %vm438_vm1, %vm438_vm1  ;;  %s4451_s1 = smov 32   ;;  %s5183_s25 = sld [smem:[#allocation63_spill]] }
 0x1f5   :  { %3410 = vmatpush3.bf16.msra.mxu0 %v3407_v3  ;;  %3418 = vmatpush3.bf16.msra.mxu1 %v3415_v7  ;;  %s5184_s19 = sld [smem:[#allocation64_spill]]  ;;  %s5185_s2 = sld [smem:[#allocation66_spill]] }
 0x1f6   :  { %3412 = vmatprep.subr.bf16.mxu0 %v3411_v10  ;;  %s5186_s7 = sld [smem:[#allocation68_spill]]  ;;  %s5187_s24 = sld [smem:[#allocation71_spill]] }
 0x1f7   :  { %v2816_v52 = vld [vmem:[%s5176_s12 + $0x1] ss:$0 sm:$0xff]  ;;  %v2812_v59 = vld [vmem:[%s5176_s12] ss:$0 sm:$0xff]  ;;  %s5188_s4 = sld [smem:[#allocation73_spill]]  ;;  %s4453_s3 = smov [#allocation37]  }
 0x1f8   :  { %3087 = vmatmul.mubr.msk.f32.vlgmr.msra.gmra.mrb[0].mxu1 %vm556_vm0, %v546_v11  ;;  %s2733_s0 = sshll.u32 %s4453_s3, 4  ;;  %s4454_s21 = smov [#allocation38]   ;;  %s2734_s0 = int_to_ptr.vmem [resolvable:$true] %s2733_s0 }
 0x1f9   :  { %3414 = vmatpush3.bf16.msra.mxu0 %v3411_v10  ;;  %s2745_s10 = sshll.u32 %s4454_s21, 4  ;;  %s4317_s11 = scalar_lea.vmem %s2734_s0, 256  ;;  %s2746_s10 = int_to_ptr.vmem [resolvable:$true] %s2745_s10 }
 0x1fa   :  { %p4318_p8 = scmp.ne.s32.totalorder %s2734_s0, %s4317_s11  ;;  %p4322_p9 = scmp.lt.s32.totalorder %s2734_s0, %s2734_s0 }
 0x1fb   :  { %p4323_p10 = scmp.lt.s32.totalorder %s4317_s11, %s4317_s11 }
 0x1fc   :  { %3080 = vmatmul.mubr.msk.f32.vlgmr.msra.gmra.mrb[0].mxu0 %vm438_vm1, %v426_v12 }
 0x1fd   :  { %p4324_p11 = por %p4323_p10, %p4322_p9 }
 0x1ff   :  { %p4325_p12 = pnand %p4324_p11, %p4318_p8 }
 0x2cb   :  { %v3088_v14 = vpop.f32.mrb[0].mxu1 }
 0x2cc   :  { %v635_v15 = vadd.f32 %v3088_v14, %v2813_v13  ;;  %v629_v16 = vpop.f32.mrb[1].mxu1 }
 0x2cd   :  { %v630_v18 = vadd.f32 %v2813_v13, %v629_v16 }
 0x2ce   :  { %v639_v19 = vmul.f32 %v635_v15, %v635_v15 }
 0x2cf   :  { %v3081_v20 = vpop.f32.mrb[0].mxu0  ;;  %v638_v21 = vmul.f32 %v630_v18, %v630_v18 }
 0x2d0   :  { %v517_v22 = vadd.f32 %v3081_v20, %v2809_v17  ;;  %v511_v23 = vpop.f32.mrb[1].mxu0  ;;  %v641_v24 = vmul.f32 %v639_v19, %v635_v15 }
 0x2d1   :  { %v512_v25 = vadd.f32 %v2809_v17, %v511_v23  ;;  %v640_v26 = vmul.f32 %v638_v21, %v630_v18 }
 0x2d2   :  { %v521_v27 = vmul.f32 %v517_v22, %v517_v22  ;;  %v643_v28 = vmul.f32 0.044715, %v641_v24 }
 0x2d3   :  { %v520_v29 = vmul.f32 %v512_v25, %v512_v25  ;;  %v642_v30 = vmul.f32 0.044715, %v640_v26  ;;  %v740_v26 = vld [vmem:[%s5177_s26 + $0x8] sm:$0xff] }
 0x2d4   :  { %v523_v31 = vmul.f32 %v521_v27, %v517_v22  ;;  %v645_v32 = vadd.f32 %v643_v28, %v635_v15  ;;  %v851_v28 = vld [vmem:[%s5178_s13] sm:$0xff] }
 0x2d5   :  { %v522_v33 = vmul.f32 %v520_v29, %v512_v25  ;;  %v644_v34 = vadd.f32 %v642_v30, %v630_v18  ;;  %v852_v29 = vld [vmem:[%s5178_s13 + $0x8] sm:$0xff] }
 0x2d6   :  { %v525_v35 = vmul.f32 0.044715, %v523_v31  ;;  %v647_v36 = vmul.f32 0.7978846, %v645_v32  ;;  %v3435_v30 = vpack.c.bf16 %v852_v29, %v851_v28  ;;  %v741_v31 = vld [vmem:[%s5177_s26 + $0x10] sm:$0xff]  ;;  %v742_v32 = vld [vmem:[%s5177_s26 + $0x18] sm:$0xff] }
 0x2d7   :  { %v524_v37 = vmul.f32 0.044715, %v522_v33  ;;  %v646_v38 = vmul.f32 0.7978846, %v644_v34  ;;  %v3423_v33 = vpack.c.bf16 %v742_v32, %v741_v31  ;;  %v853_v34 = vld [vmem:[%s5178_s13 + $0x10] sm:$0xff] }
 0x2d8   :  { %v527_v39 = vadd.f32 %v525_v35, %v517_v22  ;;  %3753 = vtanh.f32 %v647_v36  ;;  %3436 = vmatprep.subr.bf16.mxu0 %v3435_v30  ;;  %v854_v35 = vld [vmem:[%s5178_s13 + $0x18] sm:$0xff]  ;;  %v957_v29 = vld [vmem:[%s5179_s9 + $0x30] sm:$0xff] }
 0x2d9   :  { %v526_v40 = vadd.f32 %v524_v37, %v512_v25  ;;  %3755 = vtanh.f32 %v646_v38  ;;  %3438 = vmatpush3.bf16.msra.mxu0 %v3435_v30  ;;  %v3439_v36 = vpack.c.bf16 %v854_v35, %v853_v34  ;;  %v743_v37 = vld [vmem:[%s5177_s26 + $0x20] sm:$0xff]  ;;  %v744_v38 = vld [vmem:[%s5177_s26 + $0x28] sm:$0xff]  ;;  %v958_v30 = vld [vmem:[%s5179_s9 + $0x38] sm:$0xff] }
 0x2da   :  { %v529_v41 = vmul.f32 0.7978846, %v527_v39  ;;  %v3427_v39 = vpack.c.bf16 %v744_v38, %v743_v37  ;;  %v2824_v31 = vld [vmem:[#allocation19] ss:$0 sm:$0xff]  ;;  %v2819_v32 = vld [vmem:[#allocation17] ss:$0 sm:$0xff] }
 0x2db   :  { %v528_v42 = vmul.f32 0.7978846, %v526_v40  ;;  %3440 = vmatprep.subr.bf16.mxu0 %v3439_v36  ;;  %v855_v40 = vld [vmem:[%s5178_s13 + $0x20] sm:$0xff] }
 0x2dc   :  { %3757 = vtanh.f32 %v529_v41  ;;  %v856_v41 = vld [vmem:[%s5178_s13 + $0x28] sm:$0xff] }
 0x2dd   :  { %3759 = vtanh.f32 %v528_v42  ;;  %3442 = vmatpush3.bf16.msra.mxu0 %v3439_v36  ;;  %v3443_v42 = vpack.c.bf16 %v856_v41, %v855_v40 }
 0x2df   :  { %3444 = vmatprep.subr.bf16.mxu0 %v3443_v42 }
 0x2e1   :  { %3446 = vmatpush3.bf16.msra.mxu0 %v3443_v42 }
 0x2e2   :  { %v3754_v43 = vpop.eup %3753 }
 0x2e3   :  { %v3756_v44 = vpop.eup %3755  ;;  %v651_v45 = vadd.f32 1.0, %v3754_v43  ;;  %v745_v43 = vld [vmem:[%s5177_s26 + $0x30] sm:$0xff] }
 0x2e4   :  { %v650_v46 = vadd.f32 1.0, %v3756_v44  ;;  %v746_v44 = vld [vmem:[%s5177_s26 + $0x38] sm:$0xff] }
 0x2e5   :  { %v653_v48 = vmul.f32 0.5, %v651_v45  ;;  %v3431_v45 = vpack.c.bf16 %v746_v44, %v745_v43 }
 0x2e6   :  { %v3758_v47 = vpop.eup %3757  ;;  %v652_v50 = vmul.f32 0.5, %v650_v46  ;;  %v857_v46 = vld [vmem:[%s5178_s13 + $0x30] sm:$0xff] }
 0x2e7   :  { %v3760_v49 = vpop.eup %3759  ;;  %v533_v51 = vadd.f32 1.0, %v3758_v47  ;;  %v655_v55 = vmul.f32 %v653_v48, %v635_v15  ;;  %v858_v47 = vld [vmem:[%s5178_s13 + $0x38] sm:$0xff] }
 0x2e8   :  { %v532_v53 = vadd.f32 1.0, %v3760_v49  ;;  %v654_v54 = vmul.f32 %v652_v50, %v630_v18  ;;  %v3447_v48 = vpack.c.bf16 %v858_v47, %v857_v46  ;;  %v951_v49 = vld [vmem:[%s5179_s9] sm:$0xff]  ;;  %v952_v50 = vld [vmem:[%s5179_s9 + $0x8] sm:$0xff] }
 0x2e9   :  { %v535_v56 = vmul.f32 0.5, %v533_v51  ;;  %v4800_v63 = vadd.f32 %v2816_v52, %v655_v55  ;;  %v3451_v51 = vpack.c.bf16 %v952_v50, %v951_v49 }
 0x2ea   :  { %v534_v57 = vmul.f32 0.5, %v532_v53  ;;  %v4795_v58 = vadd.f32 %v2816_v52, %v654_v54  ;;  %3448 = vmatprep.subr.bf16.mxu0 %v3447_v48 }
 0x2eb   :  { %v537_v61 = vmul.f32 %v535_v56, %v517_v22  ;;  %v673_v3 = vsel %vm663_vm2, %v4800_v63, 0.0  ;;  %3450 = vmatpush3.bf16.msra.mxu0 %v3447_v48 }
 0x2ec   :  { %v536_v60 = vmul.f32 %v534_v57, %v512_v25  ;;  %v670_v62 = vsel %vm663_vm2, %v4795_v58, 0.0  ;;  %v739_v25 = vld [vmem:[%s5177_s26] sm:$0xff] }
 0x2ed   :  { %671 = vadd.xlane.f32.xlu1 %v670_v62  ;;  %v4806_v2 = vadd.f32 %v2812_v59, %v537_v61  ;;  %v3419_v27 = vpack.c.bf16 %v740_v26, %v739_v25  ;;  %v956_v26 = vld [vmem:[%s5179_s9 + $0x28] sm:$0xff] }
 0x2ee   :  { %v4802_v0 = vadd.f32 %v2812_v59, %v536_v60 }
 0x2ef   :  { %v667_v4 = vsel %vm663_vm2, %v4806_v2, 0.0  ;;  %3420 = vmatprep.subr.bf16.mxu1 %v3419_v27 }
 0x2f0   :  { %v664_v1 = vsel %vm663_vm2, %v4802_v0, 0.0  ;;  %3422 = vmatpush3.bf16.msra.mxu1 %v3419_v27 }
 0x2f1   :  { %665 = vadd.xlane.f32.xlu0 %v664_v1  ;;  %674 = vadd.xlane.f32.xlu1 %v673_v3 }
 0x2f2   :  { %3424 = vmatprep.subr.bf16.mxu1 %v3423_v33 }
 0x2f4   :  { %3426 = vmatpush3.bf16.msra.mxu1 %v3423_v33 }
 0x2f5   :  { %668 = vadd.xlane.f32.xlu0 %v667_v4  ;;  %3428 = vmatprep.subr.bf16.mxu1 %v3427_v39 }
 0x2f8   :  { %3430 = vmatpush3.bf16.msra.mxu1 %v3427_v39 }
 0x2f9   :  { %3432 = vmatprep.subr.bf16.mxu1 %v3431_v45 }
 0x2fc   :  { %3434 = vmatpush3.bf16.msra.mxu1 %v3431_v45 }
 0x2fd   :  { %3452 = vmatprep.subr.bf16.mxu1 %v3451_v51 }
 0x37a   :  { %v672_v5 = vpop.xlane.xlu1 %671 }
 0x37b   :  { %v679_v6 = vmul.f32 0.015625, %v672_v5  ;;  %v2817_v5 = vld [vmem:[#allocation14] ss:$0 sm:$0xff] }
 0x37d   :  { %v4813_v10 = vsub.f32 %v4795_v58, %v679_v6 }
 0x37e   :  { %v666_v7 = vpop.xlane.xlu0 %665  ;;  %v675_v8 = vpop.xlane.xlu1 %674 }
 0x37f   :  { %v677_v9 = vmul.f32 0.015625, %v666_v7  ;;  %v680_v11 = vmul.f32 0.015625, %v675_v8  ;;  %v687_v19 = vmul.f32 %v4813_v10, %v4813_v10  ;;  %v2818_v7 = vld [vmem:[#allocation16] ss:$0 sm:$0xff] }
 0x381   :  { %v4816_v12 = vsub.f32 %v4802_v0, %v677_v9  ;;  %v4821_v16 = vsub.f32 %v4800_v63, %v680_v11  ;;  %v695_v21 = vsel %vm663_vm2, %v687_v19, 0.0  ;;  %v954_v19 = vld [vmem:[%s5179_s9 + $0x18] sm:$0xff] }
 0x382   :  { %v669_v13 = vpop.xlane.xlu0 %668 }
 0x383   :  { %v678_v14 = vmul.f32 0.015625, %v669_v13  ;;  %v685_v15 = vmul.f32 %v4816_v12, %v4816_v12  ;;  %v688_v23 = vmul.f32 %v4821_v16, %v4821_v16 }
 0x385   :  { %v4824_v17 = vsub.f32 %v4806_v2, %v678_v14  ;;  %v689_v18 = vsel %vm663_vm2, %v685_v15, 0.0  ;;  %v698_v24 = vsel %vm663_vm2, %v688_v23, 0.0 }
 0x386   :  { %690 = vadd.xlane.f32.xlu0 %v689_v18  ;;  %v953_v18 = vld [vmem:[%s5179_s9 + $0x10] sm:$0xff] }
 0x387   :  { %v686_v20 = vmul.f32 %v4824_v17, %v4824_v17  ;;  %v3455_v23 = vpack.c.bf16 %v954_v19, %v953_v18 }
 0x389   :  { %v692_v22 = vsel %vm663_vm2, %v686_v20, 0.0 }
 0x38a   :  { %696 = vadd.xlane.f32.xlu0 %v695_v21  ;;  %693 = vadd.xlane.f32.xlu1 %v692_v22 }
 0x38e   :  { %699 = vadd.xlane.f32.xlu1 %v698_v24 }
 0x413   :  { %v691_v52 = vpop.xlane.xlu0 %690 }
 0x414   :  { %v701_v53 = vmul.f32 0.015625, %v691_v52  ;;  %v2829_v52 = vld [vmem:[#allocation20] ss:$0 sm:$0xff] }
 0x416   :  { %v705_v54 = vadd.f32 1e-05, %v701_v53 }
 0x417   :  { %v694_v55 = vpop.xlane.xlu1 %693  ;;  %v697_v56 = vpop.xlane.xlu0 %696 }
 0x418   :  { %3761 = vrsqrt.f32 %v705_v54  ;;  %v702_v57 = vmul.f32 0.015625, %v694_v55  ;;  %v703_v59 = vmul.f32 0.015625, %v697_v56 }
 0x41a   :  { %v706_v60 = vadd.f32 1e-05, %v702_v57  ;;  %v707_v61 = vadd.f32 1e-05, %v703_v59 }
 0x41b   :  { %v700_v62 = vpop.xlane.xlu1 %699 }
 0x41c   :  { %3763 = vrsqrt.f32 %v706_v60  ;;  %v704_v1 = vmul.f32 0.015625, %v700_v62 }
 0x41d   :  { %3765 = vrsqrt.f32 %v707_v61 }
 0x41e   :  { %v708_v3 = vadd.f32 1e-05, %v704_v1 }
 0x420   :  { %3767 = vrsqrt.f32 %v708_v3 }
 0x422   :  { %v3762_v4 = vpop.eup %3761 }
 0x423   :  { %v713_v6 = vmul.f32 %v3762_v4, %v4816_v12 }
 0x425   :  { %v724_v8 = vmul.f32 %v2817_v5, %v713_v6 }
 0x426   :  { %v3764_v9 = vpop.eup %3763 }
 0x427   :  { %v3766_v11 = vpop.eup %3765  ;;  %v714_v13 = vmul.f32 %v3764_v9, %v4824_v17  ;;  %v735_v14 = vadd.f32 %v2818_v7, %v724_v8  ;;  %v955_v17 = vld [vmem:[%s5179_s9 + $0x20] sm:$0xff] }
 0x428   :  { %v715_v15 = vmul.f32 %v3766_v11, %v4813_v10  ;;  %v3459_v28 = vpack.c.bf16 %v956_v26, %v955_v17  ;;  %v1051_v17 = vld [vmem:[#allocation7] sm:$0xff] }
 0x429   :  { %3105 = vmatprep.mubr.msk.f32.mxu1 %vm663_vm2, %v735_v14  ;;  %3127 = vmatprep.mubr.msk.f32.mxu0 %vm663_vm2, %v735_v14  ;;  %v725_v20 = vmul.f32 %v2817_v5, %v714_v13 }
 0x42a   :  { %v3768_v21 = vpop.eup %3767  ;;  %v726_v12 = vmul.f32 %v2817_v5, %v715_v15 }
 0x42b   :  { %v736_v22 = vadd.f32 %v2818_v7, %v725_v20  ;;  %v716_v24 = vmul.f32 %v3768_v21, %v4821_v16  ;;  %v3463_v16 = vpack.c.bf16 %v958_v30, %v957_v29  ;;  %v1054_v29 = vld [vmem:[#allocation7 + $0x18] sm:$0xff] }
 0x42c   :  { %v737_v25 = vadd.f32 %v2818_v7, %v726_v12 }
 0x42d   :  { %3106 = vmatmul.mubr.msk.f32.vlgmr.msra.gmra.mrb[2].mxu1 %vm663_vm2, %v736_v22  ;;  %3128 = vmatmul.mubr.msk.f32.vlgmr.msra.gmra.mrb[2].mxu0 %vm663_vm2, %v736_v22  ;;  %v727_v10 = vmul.f32 %v2817_v5, %v716_v24 }
 0x42e   :  { %3454 = vmatpush3.bf16.msra.mxu1 %v3451_v51  ;;  %3108 = vmatprep.mubr.msk.f32.mxu1 %vm663_vm2, %v737_v25 }
 0x42f   :  { %3130 = vmatprep.mubr.msk.f32.mxu0 %vm663_vm2, %v737_v25  ;;  %3456 = vmatprep.subr.bf16.mxu1 %v3455_v23  ;;  %v738_v27 = vadd.f32 %v2818_v7, %v727_v10 }
 0x431   :  { %3109 = vmatmul.mubr.msk.f32.gmra.mrb[4].mxu1 %vm663_vm2, %v738_v27  ;;  %3131 = vmatmul.mubr.msk.f32.gmra.mrb[4].mxu0 %vm663_vm2, %v738_v27 }
 0x432   :  { %3458 = vmatpush3.bf16.msra.mxu1 %v3455_v23  ;;  %3149 = vmatprep.mubr.msk.f32.mxu1 %vm663_vm2, %v735_v14  ;;  %v1052_v23 = vld [vmem:[#allocation7 + $0x8] sm:$0xff] }
 0x433   :  { %3460 = vmatprep.subr.bf16.mxu1 %v3459_v28 }
 0x436   :  { %3462 = vmatpush3.bf16.msra.mxu1 %v3459_v28 }
 0x437   :  { %3464 = vmatprep.subr.bf16.mxu1 %v3463_v16 }
 0x43a   :  { %3466 = vmatpush3.bf16.msra.mxu1 %v3463_v16 }
 0x43d   :  { %3150 = vmatmul.mubr.msk.f32.vlgmr.msra.gmra.mrb[6].mxu1 %vm663_vm2, %v736_v22 }
 0x43e   :  { %3152 = vmatprep.mubr.msk.f32.mxu1 %vm663_vm2, %v737_v25 }
 0x441   :  { %3153 = vmatmul.mubr.msk.f32.gmra.mrb[8].mxu1 %vm663_vm2, %v738_v27 }
 0x500   :  { %v3107_v33 = vpop.f32.mrb[2].mxu1  ;;  %v3129_v34 = vpop.f32.mrb[2].mxu0 }
 0x501   :  { %v938_v35 = vadd.f32 %v3129_v34, %v2824_v31  ;;  %v832_v36 = vpop.f32.mrb[3].mxu1  ;;  %v932_v37 = vpop.f32.mrb[3].mxu0  ;;  %v838_v53 = vadd.f32 %v3107_v33, %v2819_v32 }
 0x502   :  { %v833_v38 = vadd.f32 %v2819_v32, %v832_v36  ;;  %v933_v39 = vadd.f32 %v2824_v31, %v932_v37 }
 0x504   :  { %v3733_v41 = vpack.i.bf16 %v938_v35, %v933_v39  ;;  %v3467_v42 = vpack.c.bf16 %v938_v35, %v933_v39  ;;  %v3110_v43 = vpop.f32.mrb[4].mxu1  ;;  %v3132_v44 = vpop.f32.mrb[4].mxu0  ;;  %3163 = vmatprep.mubr.msk.f32.mxu0 %vm438_vm1, %v833_v38  ;;  %v1053_v35 = vld [vmem:[#allocation7 + $0x10] sm:$0xff] }
 0x505   :  { %v948_v45 = vadd.f32 %v3132_v44, %v2824_v31  ;;  %v842_v46 = vpop.f32.mrb[5].mxu1  ;;  %v942_v47 = vpop.f32.mrb[5].mxu0  ;;  %v848_v62 = vadd.f32 %v3110_v43, %v2819_v32 }
 0x506   :  { %v943_v48 = vadd.f32 %v2824_v31, %v942_v47  ;;  %3734 = vrot.lane.b32.xlu0 %v3733_v41, %s4450_s28  ;;  %3469 = vmatprep.subr.msk.bf16.mxu0 %vm4878_vm3, %v3467_v42  ;;  %v843_v51 = vadd.f32 %v2819_v32, %v842_v46 }
 0x507   :  { %3472 = vmatpush3.bf16.xpose.msk.msra.mxu0 %vm4878_vm3, %v3467_v42 }
 0x508   :  { %v3738_v49 = vpack.i.bf16 %v948_v45, %v943_v48  ;;  %v3473_v50 = vpack.c.bf16 %v948_v45, %v943_v48 }
 0x50a   :  { %3739 = vrot.lane.b32.xlu1 %v3738_v49, %s4450_s28  ;;  %3475 = vmatprep.subr.msk.bf16.mxu0 %vm4878_vm3, %v3473_v50 }
 0x50b   :  { %1317 = vrot.lane.b32.xlu0 %v843_v51, %s4450_s28 }
 0x50e   :  { %1313 = vrot.lane.b32.xlu1 %v833_v38, %s4450_s28 }
 0x50f   :  { %3478 = vmatpush3.bf16.xpose.msk.msra.mxu0 %vm4878_vm3, %v3473_v50 }
 0x510   :  { %v3151_v54 = vpop.f32.mrb[6].mxu1 }
 0x511   :  { %v4895_v55 = vadd.f32 %v3151_v54, %v2829_v52  ;;  %v1032_v56 = vpop.f32.mrb[7].mxu1 }
 0x512   :  { %v4897_v57 = vadd.f32 %v2829_v52, %v1032_v56  ;;  %1315 = vrot.lane.b32.xlu1 %v838_v53, %s4450_s28 }
 0x514   :  { %v3743_v59 = vpack.i.bf16 %v4895_v55, %v4897_v57  ;;  %v3479_v60 = vpack.c.bf16 %v4895_v55, %v4897_v57  ;;  %v3154_v61 = vpop.f32.mrb[8].mxu1 }
 0x515   :  { %v4904_v1 = vadd.f32 %v3154_v61, %v2829_v52  ;;  %v1042_v3 = vpop.f32.mrb[9].mxu1 }
 0x516   :  { %v4906_v4 = vadd.f32 %v2829_v52, %v1042_v3  ;;  %3480 = vmatprep.subr.bf16.mxu1 %v3479_v60  ;;  %3164 = vmatmul.mubr.msk.f32.vlgmr.msra.gmra.mrb[6].mxu0 %vm438_vm1, %v838_v53 }
 0x517   :  { %1319 = vrot.lane.b32.xlu1 %v848_v62, %s4450_s28  ;;  %3482 = vmatpush3.bf16.msra.mxu1 %v3479_v60 }
 0x518   :  { %v3748_v5 = vpack.i.bf16 %v4904_v1, %v4906_v4  ;;  %v3483_v6 = vpack.c.bf16 %v4904_v1, %v4906_v4  ;;  %3166 = vmatprep.mubr.msk.f32.mxu0 %vm438_vm1, %v843_v51 }
 0x51a   :  { %3484 = vmatprep.subr.bf16.mxu1 %v3483_v6  ;;  %3167 = vmatmul.mubr.msk.f32.gmra.mrb[8].mxu0 %vm438_vm1, %v848_v62 }
 0x51b   :  { %3486 = vmatpush3.bf16.msra.mxu1 %v3483_v6 }
 0x578   :  { %v3735_v7 = vpop.permute.xlu0 %3734 }
 0x579   :  { %v3737_v8 = vunpack.i.h.bf16 %v3735_v7  ;;  %v3736_v9 = vunpack.i.l.bf16 %v3735_v7 }
 0x57b   :  { %v3487_v11 = vpack.c.bf16 %v3737_v8, %v3736_v9 }
 0x57c   :  { %v3740_v13 = vpop.permute.xlu1 %3739 }
 0x57d   :  { %v3742_v14 = vunpack.i.h.bf16 %v3740_v13  ;;  %v3741_v15 = vunpack.i.l.bf16 %v3740_v13  ;;  %3489 = vmatprep.subr.msk.bf16.mxu0 %vm4878_vm3, %v3487_v11  ;;  %v1318_v21 = vpop.permute.xlu0 %1317 }
 0x57e   :  { %3492 = vmatpush3.bf16.xpose.msk.msra.mxu0 %vm4878_vm3, %v3487_v11 }
 0x57f   :  { %v3493_v18 = vpack.c.bf16 %v3742_v14, %v3741_v15 }
 0x580   :  { %v1314_v19 = vpop.permute.xlu1 %1313 }
 0x581   :  { %3495 = vmatprep.subr.msk.bf16.mxu0 %vm4878_vm3, %v3493_v18  ;;  %3191 = vmatprep.mubr.msk.f32.mxu0 %vm438_vm1, %v1314_v19 }
 0x584   :  { %v1316_v20 = vpop.permute.xlu1 %1315 }
 0x586   :  { %3498 = vmatpush3.bf16.xpose.msk.msra.mxu0 %vm4878_vm3, %v3493_v18 }
 0x589   :  { %v1320_v12 = vpop.permute.xlu1 %1319 }
 0x58d   :  { %3192 = vmatmul.mubr.msk.f32.vlgmr.msra.gmra.mrb[10].mxu0 %vm438_vm1, %v1316_v20 }
 0x58e   :  { %3194 = vmatprep.mubr.msk.f32.mxu0 %vm438_vm1, %v1318_v21 }
 0x591   :  { %3195 = vmatmul.mubr.msk.f32.gmra.mrb[12].mxu0 %vm438_vm1, %v1320_v12 }
 0x5e9   :  { %v3165_v22 = vpop.f32.mrb[6].mxu0 }
 0x5ea   :  { %v1165_v24 = vmul.f32 0.17677669, %v3165_v22  ;;  %v1145_v25 = vpop.f32.mrb[7].mxu0 }
 0x5eb   :  { %v1164_v26 = vmul.f32 0.17677669, %v1145_v25 }
 0x5ec   :  { %v1169_v10 = vadd.f32 %v1165_v24, %v1052_v23 }
 0x5ed   :  { %v3168_v27 = vpop.f32.mrb[8].mxu0  ;;  %v1168_v28 = vadd.f32 %v1164_v26, %v1051_v17 }
 0x5ee   :  { %v1167_v30 = vmul.f32 0.17677669, %v3168_v27  ;;  %v1155_v16 = vpop.f32.mrb[9].mxu0  ;;  %v1175_v31 = vsel %vm438_vm1, %v1169_v10, -inf }
 0x5ef   :  { %v1166_v32 = vmul.f32 0.17677669, %v1155_v16  ;;  %1176 = vmax.xlane.f32.xlu1 %v1175_v31  ;;  %v1172_v33 = vsel %vm438_vm1, %v1168_v28, -inf }
 0x5f0   :  { %1173 = vmax.xlane.f32.xlu0 %v1172_v33  ;;  %v1171_v34 = vadd.f32 %v1167_v30, %v1054_v29 }
 0x5f1   :  { %v1170_v37 = vadd.f32 %v1166_v32, %v1053_v35 }
 0x5f2   :  { %v1181_v36 = vsel %vm438_vm1, %v1171_v34, -inf }
 0x5f3   :  { %v1178_v38 = vsel %vm438_vm1, %v1170_v37, -inf }
 0x5f4   :  { %1182 = vmax.xlane.f32.xlu0 %v1181_v36 }
 0x5f8   :  { %1179 = vmax.xlane.f32.xlu0 %v1178_v38 }
 0x660   :  { %v3193_v39 = vpop.f32.mrb[10].mxu0 }
 0x661   :  { %v1431_v40 = vmul.f32 0.17677669, %v3193_v39  ;;  %v1411_v41 = vpop.f32.mrb[11].mxu0 }
 0x662   :  { %v1430_v42 = vmul.f32 0.17677669, %v1411_v41 }
 0x663   :  { %v1435_v43 = vadd.f32 %v1431_v40, %v1052_v23 }
 0x664   :  { %v3196_v44 = vpop.f32.mrb[12].mxu0  ;;  %v1434_v45 = vadd.f32 %v1430_v42, %v1051_v17 }
 0x665   :  { %v1433_v46 = vmul.f32 0.17677669, %v3196_v44  ;;  %v1421_v47 = vpop.f32.mrb[13].mxu0  ;;  %v1441_v48 = vsel %vm438_vm1, %v1435_v43, -inf }
 0x666   :  { %v1432_v49 = vmul.f32 0.17677669, %v1421_v47  ;;  %1442 = vmax.xlane.f32.xlu1 %v1441_v48  ;;  %v1438_v50 = vsel %vm438_vm1, %v1434_v45, -inf }
 0x667   :  { %1439 = vmax.xlane.f32.xlu0 %v1438_v50  ;;  %v1437_v51 = vadd.f32 %v1433_v46, %v1054_v29 }
 0x668   :  { %v1436_v52 = vadd.f32 %v1432_v49, %v1053_v35 }
 0x669   :  { %v1447_v53 = vsel %vm438_vm1, %v1437_v51, -inf }
 0x66a   :  { %1448 = vmax.xlane.f32.xlu1 %v1447_v53  ;;  %v1444_v54 = vsel %vm438_vm1, %v1436_v52, -inf }
 0x66b   :  { %1445 = vmax.xlane.f32.xlu0 %v1444_v54 }
 0x67c   :  { %v1177_v56 = vpop.xlane.xlu1 %1176 }
 0x67d   :  { %v1185_v60 = vsub.f32 %v1169_v10, %v1177_v56  ;;  %v1174_v61 = vpop.xlane.xlu0 %1173 }
 0x67e   :  { %v1184_v62 = vsub.f32 %v1168_v28, %v1174_v61 }
 0x67f   :  { %v1190_v3 = vmul.f32 1.442695, %v1185_v60 }
 0x680   :  { %v1188_v6 = vmul.f32 1.442695, %v1184_v62 }
 0x681   :  { %3769 = vpow2.f32 %v1190_v3  ;;  %v1183_v7 = vpop.xlane.xlu0 %1182 }
 0x682   :  { %3771 = vpow2.f32 %v1188_v6  ;;  %v1187_v8 = vsub.f32 %v1171_v34, %v1183_v7 }
 0x684   :  { %v1194_v9 = vmul.f32 1.442695, %v1187_v8 }
 0x685   :  { %v1180_v11 = vpop.xlane.xlu0 %1179 }
 0x686   :  { %3773 = vpow2.f32 %v1194_v9  ;;  %v1186_v13 = vsub.f32 %v1170_v37, %v1180_v11 }
 0x688   :  { %v1192_v14 = vmul.f32 1.442695, %v1186_v13 }
 0x68a   :  { %3775 = vpow2.f32 %v1192_v14 }
 0x68b   :  { %v3770_v15 = vpop.eup %3769 }
 0x68c   :  { %v3772_v18 = vpop.eup %3771  ;;  %v1199_v19 = vsel %vm438_vm1, %v3770_v15, 0.0 }
 0x68d   :  { %1200 = vadd.xlane.f32.xlu1 %v1199_v19  ;;  %v1196_v20 = vsel %vm438_vm1, %v3772_v18, 0.0  ;;  %v1615_v19 = vld [vmem:[%s5182_s8] sm:$0xff] }
 0x68e   :  { %1197 = vadd.xlane.f32.xlu0 %v1196_v20  ;;  %v1616_v20 = vld [vmem:[%s5182_s8 + $0x8] sm:$0xff] }
 0x690   :  { %v3774_v21 = vpop.eup %3773 }
 0x691   :  { %v1205_v12 = vsel %vm438_vm1, %v3774_v21, 0.0 }
 0x692   :  { %1206 = vadd.xlane.f32.xlu1 %v1205_v12 }
 0x694   :  { %v3776_v22 = vpop.eup %3775 }
 0x695   :  { %v1202_v23 = vsel %vm438_vm1, %v3776_v22, 0.0 }
 0x696   :  { %1203 = vadd.xlane.f32.xlu0 %v1202_v23  ;;  %v1618_v23 = vld [vmem:[%s5182_s8 + $0x18] sm:$0xff] }
 0x6f3   :  { %v1443_v24 = vpop.xlane.xlu1 %1442 }
 0x6f4   :  { %v1451_v25 = vsub.f32 %v1435_v43, %v1443_v24  ;;  %v1440_v17 = vpop.xlane.xlu0 %1439 }
 0x6f5   :  { %v1450_v26 = vsub.f32 %v1434_v45, %v1440_v17  ;;  %v1619_v17 = vld [vmem:[%s5182_s8 + $0x20] sm:$0xff] }
 0x6f6   :  { %v1456_v10 = vmul.f32 1.442695, %v1451_v25 }
 0x6f7   :  { %v1454_v27 = vmul.f32 1.442695, %v1450_v26  ;;  %v1449_v28 = vpop.xlane.xlu1 %1448  ;;  %v1620_v26 = vld [vmem:[%s5182_s8 + $0x28] sm:$0xff] }
 0x6f8   :  { %3777 = vpow2.f32 %v1456_v10  ;;  %v1453_v29 = vsub.f32 %v1437_v51, %v1449_v28  ;;  %v1446_v30 = vpop.xlane.xlu0 %1445  ;;  %v3515_v10 = vpack.c.bf16 %v1620_v26, %v1619_v17  ;;  %v1622_v28 = vld [vmem:[%s5182_s8 + $0x38] sm:$0xff]  ;;  %v1811_v17 = vld [vmem:[%s5183_s25 + $0x30] sm:$0xff] }
 0x6f9   :  { %3779 = vpow2.f32 %v1454_v27  ;;  %v1452_v16 = vsub.f32 %v1436_v52, %v1446_v30  ;;  %v1621_v27 = vld [vmem:[%s5182_s8 + $0x30] sm:$0xff]  ;;  %v1812_v26 = vld [vmem:[%s5183_s25 + $0x38] sm:$0xff] }
 0x6fa   :  { %v1460_v31 = vmul.f32 1.442695, %v1453_v29  ;;  %v3519_v29 = vpack.c.bf16 %v1622_v28, %v1621_v27 }
 0x6fb   :  { %v1458_v32 = vmul.f32 1.442695, %v1452_v16 }
 0x6fc   :  { %3781 = vpow2.f32 %v1460_v31 }
 0x6fd   :  { %3783 = vpow2.f32 %v1458_v32 }
 0x702   :  { %v3778_v33 = vpop.eup %3777 }
 0x703   :  { %v3780_v34 = vpop.eup %3779  ;;  %v1465_v35 = vsel %vm438_vm1, %v3778_v33, 0.0 }
 0x704   :  { %1466 = vadd.xlane.f32.xlu1 %v1465_v35  ;;  %v1462_v36 = vsel %vm438_vm1, %v3780_v34, 0.0 }
 0x705   :  { %1463 = vadd.xlane.f32.xlu0 %v1462_v36 }
 0x706   :  { %v3782_v37 = vpop.eup %3781 }
 0x707   :  { %v3784_v38 = vpop.eup %3783  ;;  %v1471_v39 = vsel %vm438_vm1, %v3782_v37, 0.0 }
 0x708   :  { %1472 = vadd.xlane.f32.xlu1 %v1471_v39  ;;  %v1468_v40 = vsel %vm438_vm1, %v3784_v38, 0.0 }
 0x709   :  { %1469 = vadd.xlane.f32.xlu0 %v1468_v40 }
 0x719   :  { %3749 = vrot.lane.b32.xlu1 %v3748_v5, %s4450_s28 }
 0x71a   :  { %v1201_v41 = vpop.xlane.xlu1 %1200 }
 0x71b   :  { %3785 = vrcp.f32 %v1201_v41  ;;  %v1198_v42 = vpop.xlane.xlu0 %1197  ;;  %v2858_v41 = vld [vmem:[#allocation22] ss:$0 sm:$0xff] }
 0x71c   :  { %3787 = vrcp.f32 %v1198_v42 }
 0x71f   :  { %3744 = vrot.lane.b32.xlu0 %v3743_v59, %s4450_s28  ;;  %v1207_v43 = vpop.xlane.xlu1 %1206 }
 0x720   :  { %3789 = vrcp.f32 %v1207_v43 }
 0x723   :  { %v1204_v44 = vpop.xlane.xlu0 %1203 }
 0x724   :  { %3791 = vrcp.f32 %v1204_v44 }
 0x725   :  { %v3786_v45 = vpop.eup %3785 }
 0x726   :  { %v3788_v46 = vpop.eup %3787  ;;  %v1213_v48 = vmul.f32 %v3786_v45, %v3770_v15 }
 0x727   :  { %v1212_v47 = vmul.f32 %v3788_v46, %v3772_v18 }
 0x729   :  { %3177 = vmatprep.mubr.msk.f32.mxu1 %vm438_vm1, %v1212_v47 }
 0x72a   :  { %3178 = vmatmul.mubr.msk.f32.vlgmr.msra.gmra.mrb[10].mxu1 %vm438_vm1, %v1213_v48  ;;  %v3790_v1 = vpop.eup %3789 }
 0x72b   :  { %v1215_v49 = vmul.f32 %v3790_v1, %v3774_v21  ;;  %v1617_v21 = vld [vmem:[%s5182_s8 + $0x10] sm:$0xff] }
 0x72c   :  { %v3511_v25 = vpack.c.bf16 %v1618_v23, %v1617_v21  ;;  %v1807_v21 = vld [vmem:[%s5183_s25 + $0x10] sm:$0xff]  ;;  %v1809_v23 = vld [vmem:[%s5183_s25 + $0x20] sm:$0xff] }
 0x72e   :  { %v3792_v4 = vpop.eup %3791 }
 0x72f   :  { %v1214_v5 = vmul.f32 %v3792_v4, %v3776_v22  ;;  %v3507_v22 = vpack.c.bf16 %v1616_v20, %v1615_v19  ;;  %v1806_v19 = vld [vmem:[%s5183_s25 + $0x8] sm:$0xff] }
 0x731   :  { %3180 = vmatprep.mubr.msk.f32.mxu1 %vm438_vm1, %v1214_v5 }
 0x732   :  { %3181 = vmatmul.mubr.msk.f32.gmra.mrb[12].mxu1 %vm438_vm1, %v1215_v49 }
 0x791   :  { %v1467_v55 = vpop.xlane.xlu1 %1466 }
 0x792   :  { %v1464_v57 = vpop.xlane.xlu0 %1463 }
 0x793   :  { %3793 = vrcp.f32 %v1464_v57 }
 0x794   :  { %3795 = vrcp.f32 %v1467_v55 }
 0x795   :  { %v1473_v59 = vpop.xlane.xlu1 %1472 }
 0x796   :  { %v1470_v50 = vpop.xlane.xlu0 %1469 }
 0x797   :  { %3797 = vrcp.f32 %v1470_v50 }
 0x798   :  { %3799 = vrcp.f32 %v1473_v59 }
 0x799   :  { %v3750_v51 = vpop.permute.xlu1 %3749 }
 0x79a   :  { %v3745_v52 = vpop.permute.xlu0 %3744  ;;  %v3752_v53 = vunpack.i.h.bf16 %v3750_v51  ;;  %v3751_v54 = vunpack.i.l.bf16 %v3750_v51 }
 0x79b   :  { %v3747_v56 = vunpack.i.h.bf16 %v3745_v52  ;;  %v3746_v60 = vunpack.i.l.bf16 %v3745_v52 }
 0x79c   :  { %v3503_v6 = vpack.c.bf16 %v3752_v53, %v3751_v54 }
 0x79d   :  { %v3794_v61 = vpop.eup %3793  ;;  %v3499_v62 = vpack.c.bf16 %v3747_v56, %v3746_v60 }
 0x79e   :  { %v1478_v3 = vmul.f32 %v3794_v61, %v3780_v34  ;;  %v3796_v7 = vpop.eup %3795 }
 0x79f   :  { %3500 = vmatprep.subr.bf16.mxu1 %v3499_v62  ;;  %v1479_v9 = vmul.f32 %v3796_v7, %v3778_v33 }
 0x7a0   :  { %3502 = vmatpush3.bf16.msra.mxu1 %v3499_v62  ;;  %3205 = vmatprep.mubr.msk.f32.mxu1 %vm438_vm1, %v1478_v3 }
 0x7a1   :  { %3504 = vmatprep.subr.bf16.mxu1 %v3503_v6  ;;  %v3798_v8 = vpop.eup %3797 }
 0x7a2   :  { %v3800_v11 = vpop.eup %3799  ;;  %v1480_v13 = vmul.f32 %v3798_v8, %v3784_v38 }
 0x7a3   :  { %v1481_v14 = vmul.f32 %v3800_v11, %v3782_v37 }
 0x7a4   :  { %3506 = vmatpush3.bf16.msra.mxu1 %v3503_v6 }
 0x7a5   :  { %3508 = vmatprep.subr.bf16.mxu1 %v3507_v22 }
 0x7a7   :  { %3206 = vmatmul.mubr.msk.f32.vlgmr.msra.gmra.mrb[14].mxu1 %vm438_vm1, %v1479_v9 }
 0x7a8   :  { %3208 = vmatprep.mubr.msk.f32.mxu1 %vm438_vm1, %v1480_v13  ;;  %3510 = vmatpush3.bf16.msra.mxu1 %v3507_v22 }
 0x7a9   :  { %3512 = vmatprep.subr.bf16.mxu1 %v3511_v25 }
 0x7ab   :  { %3209 = vmatmul.mubr.msk.f32.gmra.mrb[16].mxu1 %vm438_vm1, %v1481_v14 }
 0x7ac   :  { %3514 = vmatpush3.bf16.msra.mxu1 %v3511_v25 }
 0x7ad   :  { %3516 = vmatprep.subr.bf16.mxu1 %v3515_v10 }
 0x7b0   :  { %3518 = vmatpush3.bf16.msra.mxu1 %v3515_v10  ;;  %v3535_v10 = vpack.c.bf16 %v1812_v26, %v1811_v17  ;;  %v2865_v17 = vld [vmem:[#allocation26] ss:$0 sm:$0xff] }
 0x7b1   :  { %3520 = vmatprep.subr.bf16.mxu1 %v3519_v29 }
 0x7b4   :  { %3522 = vmatpush3.bf16.msra.mxu1 %v3519_v29 }
 0x7fd   :  { %v3179_v15 = vpop.f32.mrb[10].mxu1 }
 0x7fe   :  { %v1294_v18 = vpop.f32.mrb[11].mxu1 }
 0x805   :  { %v3182_v12 = vpop.f32.mrb[12].mxu1 }
 0x806   :  { %v1304_v24 = vpop.f32.mrb[13].mxu1 }
 0x87a   :  { %v3207_v30 = vpop.f32.mrb[14].mxu1 }
 0x87b   :  { %v1576_v16 = vpop.f32.mrb[15].mxu1 }
 0x87c   :  { %1599 = vrot.lane.b32.xlu1 %v1576_v16, %s4451_s1 }
 0x87e   :  { %v3210_v31 = vpop.f32.mrb[16].mxu1 }
 0x87f   :  { %v1586_v32 = vpop.f32.mrb[17].mxu1 }
 0x880   :  { %1601 = vrot.lane.b32.xlu1 %v3207_v30, %s4451_s1  ;;  %1603 = vrot.lane.b32.xlu0 %v1586_v32, %s4451_s1 }
 0x884   :  { %1605 = vrot.lane.b32.xlu1 %v3210_v31, %s4451_s1 }
 0x8ee   :  { %v1600_v33 = vpop.permute.xlu1 %1599 }
 0x8ef   :  { %v1611_v34 = vsel %vm438_vm1, %v1294_v18, %v1600_v33  ;;  %v1805_v18 = vld [vmem:[%s5183_s25] sm:$0xff] }
 0x8f0   :  { %3227 = vmatprep.mubr.msk.f32.mxu1 %vm663_vm2, %v1611_v34  ;;  %v3523_v20 = vpack.c.bf16 %v1806_v19, %v1805_v18  ;;  %v1965_v18 = vld [vmem:[%s5184_s19 + $0x60] sm:$0xff]  ;;  %v1966_v19 = vld [vmem:[%s5184_s19 + $0x68] sm:$0xff] }
 0x8f2   :  { %v1602_v35 = vpop.permute.xlu1 %1601  ;;  %v1604_v36 = vpop.permute.xlu0 %1603  ;;  %3524 = vmatprep.subr.bf16.mxu0 %v3523_v20 }
 0x8f3   :  { %v1612_v37 = vsel %vm438_vm1, %v3179_v15, %v1602_v35  ;;  %v1613_v38 = vsel %vm438_vm1, %v1304_v24, %v1604_v36  ;;  %3526 = vmatpush3.bf16.msra.mxu0 %v3523_v20  ;;  %v1810_v24 = vld [vmem:[%s5183_s25 + $0x28] sm:$0xff]  ;;  %v3563_v20 = vpack.c.bf16 %v1966_v19, %v1965_v18  ;;  %v2083_v18 = vld [vmem:[%s5185_s2 + $0x30] sm:$0xff]  ;;  %v2084_v19 = vld [vmem:[%s5185_s2 + $0x38] sm:$0xff] }
 0x8f4   :  { %3228 = vmatmul.mubr.msk.f32.vlgmr.msra.gmra.mrb[18].mxu1 %vm663_vm2, %v1612_v37  ;;  %v3531_v25 = vpack.c.bf16 %v1810_v24, %v1809_v23  ;;  %v2077_v23 = vld [vmem:[%s5185_s2] sm:$0xff]  ;;  %v2078_v24 = vld [vmem:[%s5185_s2 + $0x8] sm:$0xff] }
 0x8f5   :  { %3230 = vmatprep.mubr.msk.f32.mxu1 %vm663_vm2, %v1613_v38 }
 0x8f6   :  { %v1606_v39 = vpop.permute.xlu1 %1605 }
 0x8f7   :  { %v1614_v40 = vsel %vm438_vm1, %v3182_v12, %v1606_v39  ;;  %v1808_v12 = vld [vmem:[%s5183_s25 + $0x18] sm:$0xff]  ;;  %v2863_v39 = vld [vmem:[#allocation23] ss:$0 sm:$0xff] }
 0x8f8   :  { %3231 = vmatmul.mubr.msk.f32.gmra.mrb[20].mxu1 %vm663_vm2, %v1614_v40  ;;  %v3527_v22 = vpack.c.bf16 %v1808_v12, %v1807_v21  ;;  %v1967_v21 = vld [vmem:[%s5184_s19 + $0x70] sm:$0xff]  ;;  %v1968_v12 = vld [vmem:[%s5184_s19 + $0x78] sm:$0xff] }
 0x8fa   :  { %3528 = vmatprep.subr.bf16.mxu0 %v3527_v22 }
 0x8fb   :  { %3530 = vmatpush3.bf16.msra.mxu0 %v3527_v22  ;;  %v3567_v22 = vpack.c.bf16 %v1968_v12, %v1967_v21  ;;  %v2870_v21 = vld [vmem:[#allocation28] ss:$0 sm:$0xff] }
 0x8fc   :  { %3532 = vmatprep.subr.bf16.mxu0 %v3531_v25 }
 0x8ff   :  { %3534 = vmatpush3.bf16.msra.mxu0 %v3531_v25  ;;  %v3571_v25 = vpack.c.bf16 %v2078_v24, %v2077_v23 }
 0x900   :  { %3536 = vmatprep.subr.bf16.mxu0 %v3535_v10 }
 0x903   :  { %3538 = vmatpush3.bf16.msra.mxu0 %v3535_v10 }
 0x904   :  { %3572 = vmatprep.subr.bf16.mxu0 %v3571_v25 }
 0x9c7   :  { %v3229_v42 = vpop.f32.mrb[18].mxu1 }
 0x9c8   :  { %v1714_v43 = vadd.f32 %v3229_v42, %v2858_v41  ;;  %v1708_v44 = vpop.f32.mrb[19].mxu1 }
 0x9c9   :  { %v1709_v45 = vadd.f32 %v2858_v41, %v1708_v44  ;;  %v2864_v44 = vld [vmem:[#allocation25] ss:$0 sm:$0xff] }
 0x9ca   :  { %v4981_v46 = vadd.f32 %v1714_v43, %v4806_v2 }
 0x9cb   :  { %v4984_v47 = vadd.f32 %v1709_v45, %v4802_v0  ;;  %v3232_v48 = vpop.f32.mrb[20].mxu1 }
 0x9cc   :  { %v1718_v1 = vpop.f32.mrb[21].mxu1  ;;  %v1734_v4 = vsel %vm663_vm2, %v4981_v46, 0.0  ;;  %v1724_v5 = vadd.f32 %v3232_v48, %v2858_v41 }
 0x9cd   :  { %v1719_v49 = vadd.f32 %v2858_v41, %v1718_v1  ;;  %1735 = vadd.xlane.f32.xlu1 %v1734_v4  ;;  %v1731_v55 = vsel %vm663_vm2, %v4984_v47, 0.0 }
 0x9ce   :  { %1732 = vadd.xlane.f32.xlu0 %v1731_v55  ;;  %v4994_v2 = vadd.f32 %v1724_v5, %v4800_v63 }
 0x9cf   :  { %v4991_v57 = vadd.f32 %v1719_v49, %v4795_v58 }
 0x9d0   :  { %v1740_v59 = vsel %vm663_vm2, %v4994_v2, 0.0 }
 0x9d1   :  { %v1737_v0 = vsel %vm663_vm2, %v4991_v57, 0.0 }
 0x9d2   :  { %1738 = vadd.xlane.f32.xlu0 %v1737_v0 }
 0x9d6   :  { %1741 = vadd.xlane.f32.xlu0 %v1740_v59 }
 0xa5a   :  { %v1736_v50 = vpop.xlane.xlu1 %1735 }
 0xa5b   :  { %v1744_v51 = vmul.f32 0.015625, %v1736_v50  ;;  %v1733_v52 = vpop.xlane.xlu0 %1732 }
 0xa5c   :  { %v1743_v53 = vmul.f32 0.015625, %v1733_v52  ;;  %v1953_v52 = vld [vmem:[%s5184_s19] sm:$0xff] }
 0xa5d   :  { %v1748_v54 = vsub.f32 %v4981_v46, %v1744_v51 }
 0xa5e   :  { %v1747_v58 = vsub.f32 %v4984_v47, %v1743_v53  ;;  %v1954_v53 = vld [vmem:[%s5184_s19 + $0x8] sm:$0xff] }
 0xa5f   :  { %v1739_v56 = vpop.xlane.xlu0 %1738  ;;  %v1752_v60 = vmul.f32 %v1748_v54, %v1748_v54 }
 0xa60   :  { %v1745_v63 = vmul.f32 0.015625, %v1739_v56  ;;  %v1751_v61 = vmul.f32 %v1747_v58, %v1747_v58  ;;  %v1956_v56 = vld [vmem:[%s5184_s19 + $0x18] sm:$0xff] }
 0xa61   :  { %v1758_v62 = vsel %vm663_vm2, %v1752_v60, 0.0 }
 0xa62   :  { %v1749_v3 = vsub.f32 %v4991_v57, %v1745_v63  ;;  %1759 = vadd.xlane.f32.xlu1 %v1758_v62  ;;  %v1755_v6 = vsel %vm663_vm2, %v1751_v61, 0.0  ;;  %v1957_v63 = vld [vmem:[%s5184_s19 + $0x20] sm:$0xff]  ;;  %v1958_v61 = vld [vmem:[%s5184_s19 + $0x28] sm:$0xff] }
 0xa63   :  { %1756 = vadd.xlane.f32.xlu0 %v1755_v6  ;;  %v1742_v7 = vpop.xlane.xlu0 %1741  ;;  %v3547_v62 = vpack.c.bf16 %v1958_v61, %v1957_v63  ;;  %v1960_v6 = vld [vmem:[%s5184_s19 + $0x38] sm:$0xff] }
 0xa64   :  { %v1746_v8 = vmul.f32 0.015625, %v1742_v7  ;;  %v1753_v9 = vmul.f32 %v1749_v3, %v1749_v3 }
 0xa66   :  { %v1750_v11 = vsub.f32 %v4994_v2, %v1746_v8  ;;  %v1761_v13 = vsel %vm663_vm2, %v1753_v9, 0.0  ;;  %v1961_v8 = vld [vmem:[%s5184_s19 + $0x40] sm:$0xff]  ;;  %v1962_v9 = vld [vmem:[%s5184_s19 + $0x48] sm:$0xff] }
 0xa67   :  { %1762 = vadd.xlane.f32.xlu0 %v1761_v13  ;;  %v1963_v13 = vld [vmem:[%s5184_s19 + $0x50] sm:$0xff] }
 0xa68   :  { %v1754_v14 = vmul.f32 %v1750_v11, %v1750_v11 }
 0xa6a   :  { %v1764_v15 = vsel %vm663_vm2, %v1754_v14, 0.0  ;;  %v1964_v14 = vld [vmem:[%s5184_s19 + $0x58] sm:$0xff] }
 0xa6b   :  { %1765 = vadd.xlane.f32.xlu1 %v1764_v15  ;;  %v3559_v15 = vpack.c.bf16 %v1964_v14, %v1963_v13  ;;  %v2081_v13 = vld [vmem:[%s5185_s2 + $0x20] sm:$0xff]  ;;  %v2082_v14 = vld [vmem:[%s5185_s2 + $0x28] sm:$0xff] }
 0xaef   :  { %v1760_v27 = vpop.xlane.xlu1 %1759 }
 0xaf0   :  { %v1768_v28 = vmul.f32 0.015625, %v1760_v27  ;;  %v1757_v29 = vpop.xlane.xlu0 %1756 }
 0xaf1   :  { %v1767_v30 = vmul.f32 0.015625, %v1757_v29 }
 0xaf2   :  { %v1772_v16 = vadd.f32 1e-05, %v1768_v28 }
 0xaf3   :  { %v1771_v31 = vadd.f32 1e-05, %v1767_v30 }
 0xaf4   :  { %3801 = vrsqrt.f32 %v1772_v16  ;;  %v1763_v32 = vpop.xlane.xlu0 %1762 }
 0xaf5   :  { %3803 = vrsqrt.f32 %v1771_v31  ;;  %v1769_v33 = vmul.f32 0.015625, %v1763_v32 }
 0xaf7   :  { %v1773_v34 = vadd.f32 1e-05, %v1769_v33 }
 0xaf8   :  { %v1766_v35 = vpop.xlane.xlu1 %1765 }
 0xaf9   :  { %3805 = vrsqrt.f32 %v1773_v34  ;;  %v1770_v36 = vmul.f32 0.015625, %v1766_v35 }
 0xafb   :  { %v1774_v37 = vadd.f32 1e-05, %v1770_v36 }
 0xafd   :  { %3807 = vrsqrt.f32 %v1774_v37 }
 0xafe   :  { %v3802_v38 = vpop.eup %3801 }
 0xaff   :  { %v3804_v40 = vpop.eup %3803  ;;  %v1780_v41 = vmul.f32 %v3802_v38, %v1748_v54  ;;  %v3539_v54 = vpack.c.bf16 %v1954_v53, %v1953_v52 }
 0xb00   :  { %v1779_v42 = vmul.f32 %v3804_v40, %v1747_v58  ;;  %v1955_v58 = vld [vmem:[%s5184_s19 + $0x10] sm:$0xff] }
 0xb01   :  { %v1791_v43 = vmul.f32 %v2863_v39, %v1780_v41  ;;  %3540 = vmatprep.subr.bf16.mxu1 %v3539_v54  ;;  %v3543_v60 = vpack.c.bf16 %v1956_v56, %v1955_v58 }
 0xb02   :  { %v1790_v45 = vmul.f32 %v2863_v39, %v1779_v42  ;;  %3542 = vmatpush3.bf16.msra.mxu1 %v3539_v54 }
 0xb03   :  { %v3806_v48 = vpop.eup %3805  ;;  %v1802_v5 = vadd.f32 %v2864_v44, %v1791_v43  ;;  %3544 = vmatprep.subr.bf16.mxu1 %v3543_v60 }
 0xb04   :  { %v1801_v1 = vadd.f32 %v2864_v44, %v1790_v45  ;;  %v1781_v4 = vmul.f32 %v3806_v48, %v1749_v3  ;;  %v1959_v3 = vld [vmem:[%s5184_s19 + $0x30] sm:$0xff] }
 0xb05   :  { %v3551_v7 = vpack.c.bf16 %v1960_v6, %v1959_v3 }
 0xb06   :  { %3249 = vmatprep.mubr.msk.f32.mxu0 %vm663_vm2, %v1801_v1  ;;  %v1792_v49 = vmul.f32 %v2863_v39, %v1781_v4  ;;  %3546 = vmatpush3.bf16.msra.mxu1 %v3543_v60 }
 0xb07   :  { %v3808_v55 = vpop.eup %3807  ;;  %3250 = vmatmul.mubr.msk.f32.vlgmr.msra.gmra.mrb[14].mxu0 %vm663_vm2, %v1802_v5  ;;  %3548 = vmatprep.subr.bf16.mxu1 %v3547_v62 }
 0xb08   :  { %v1803_v0 = vadd.f32 %v2864_v44, %v1792_v49  ;;  %v1782_v59 = vmul.f32 %v3808_v55, %v1750_v11  ;;  %v3555_v11 = vpack.c.bf16 %v1962_v9, %v1961_v8  ;;  %3574 = vmatpush3.bf16.msra.mxu0 %v3571_v25  ;;  %v2079_v8 = vld [vmem:[%s5185_s2 + $0x10] sm:$0xff]  ;;  %v2080_v9 = vld [vmem:[%s5185_s2 + $0x18] sm:$0xff] }
 0xb0a   :  { %3252 = vmatprep.mubr.msk.f32.mxu0 %vm663_vm2, %v1803_v0  ;;  %v1793_v50 = vmul.f32 %v2863_v39, %v1782_v59  ;;  %3550 = vmatpush3.bf16.msra.mxu1 %v3547_v62 }
 0xb0b   :  { %3552 = vmatprep.subr.bf16.mxu1 %v3551_v7 }
 0xb0c   :  { %v1804_v51 = vadd.f32 %v2864_v44, %v1793_v50 }
 0xb0e   :  { %3253 = vmatmul.mubr.msk.f32.gmra.mrb[16].mxu0 %vm663_vm2, %v1804_v51  ;;  %3554 = vmatpush3.bf16.msra.mxu1 %v3551_v7 }
 0xb0f   :  { %3556 = vmatprep.subr.bf16.mxu1 %v3555_v11 }
 0xb12   :  { %3558 = vmatpush3.bf16.msra.mxu1 %v3555_v11  ;;  %v3575_v11 = vpack.c.bf16 %v2080_v9, %v2079_v8 }
 0xb13   :  { %3560 = vmatprep.subr.bf16.mxu1 %v3559_v15 }
 0xb14   :  { %3576 = vmatprep.subr.bf16.mxu0 %v3575_v11 }
 0xb15   :  { %3578 = vmatpush3.bf16.msra.mxu0 %v3575_v11 }
 0xb16   :  { %3562 = vmatpush3.bf16.msra.mxu1 %v3559_v15  ;;  %v3579_v15 = vpack.c.bf16 %v2082_v14, %v2081_v13  ;;  %v2385_v13 = vld [vmem:[#allocation34 + $0x10] sm:$0xff]  ;;  %v2386_v14 = vld [vmem:[#allocation34 + $0x18] sm:$0xff] }
 0xb17   :  { %3564 = vmatprep.subr.bf16.mxu1 %v3563_v20 }
 0xb18   :  { %3580 = vmatprep.subr.bf16.mxu0 %v3579_v15 }
 0xb19   :  { %3582 = vmatpush3.bf16.msra.mxu0 %v3579_v15 }
 0xb1a   :  { %3566 = vmatpush3.bf16.msra.mxu1 %v3563_v20  ;;  %v3583_v20 = vpack.c.bf16 %v2084_v19, %v2083_v18  ;;  %v3623_v19 = vpack.c.bf16 %v2386_v14, %v2385_v13  ;;  %v2598_v13 = vld [vmem:[%s4633_s17 + $0x18] sm:$0xff] }
 0xb1b   :  { %3568 = vmatprep.subr.bf16.mxu1 %v3567_v22 }
 0xb1c   :  { %3584 = vmatprep.subr.bf16.mxu0 %v3583_v20 }
 0xb1d   :  { %3586 = vmatpush3.bf16.msra.mxu0 %v3583_v20 }
 0xb1e   :  { %3570 = vmatpush3.bf16.msra.mxu1 %v3567_v22 }
 0xbda   :  { %v3251_v26 = vpop.f32.mrb[14].mxu0 }
 0xbdb   :  { %v1904_v10 = vadd.f32 %v3251_v26, %v2865_v17  ;;  %v1898_v27 = vpop.f32.mrb[15].mxu0 }
 0xbdc   :  { %v1899_v28 = vadd.f32 %v2865_v17, %v1898_v27 }
 0xbdd   :  { %v1918_v29 = vmul.f32 %v1904_v10, %v1904_v10 }
 0xbde   :  { %v1917_v30 = vmul.f32 %v1899_v28, %v1899_v28 }
 0xbdf   :  { %v1922_v16 = vmul.f32 %v1918_v29, %v1904_v10  ;;  %v2189_v29 = vld [vmem:[#allocation31] sm:$0xff] }
 0xbe0   :  { %v1921_v31 = vmul.f32 %v1917_v30, %v1899_v28  ;;  %v2190_v30 = vld [vmem:[#allocation31 + $0x8] sm:$0xff] }
 0xbe1   :  { %v1926_v32 = vmul.f32 0.044715, %v1922_v16  ;;  %v3254_v33 = vpop.f32.mrb[16].mxu0  ;;  %v3587_v16 = vpack.c.bf16 %v2190_v30, %v2189_v29  ;;  %v2497_v30 = vld [vmem:[#allocation35] sm:$0xff] }
 0xbe2   :  { %v1925_v34 = vmul.f32 0.044715, %v1921_v31  ;;  %v1914_v35 = vadd.f32 %v3254_v33, %v2865_v17  ;;  %v1908_v36 = vpop.f32.mrb[17].mxu0  ;;  %v2191_v31 = vld [vmem:[#allocation31 + $0x10] sm:$0xff] }
 0xbe3   :  { %v1930_v37 = vadd.f32 %v1926_v32, %v1904_v10  ;;  %v1909_v38 = vadd.f32 %v2865_v17, %v1908_v36  ;;  %3588 = vmatprep.subr.bf16.mxu0 %v3587_v16  ;;  %v2192_v32 = vld [vmem:[#allocation31 + $0x18] sm:$0xff] }
 0xbe4   :  { %v1929_v39 = vadd.f32 %v1925_v34, %v1899_v28  ;;  %v1920_v40 = vmul.f32 %v1914_v35, %v1914_v35  ;;  %v3591_v33 = vpack.c.bf16 %v2192_v32, %v2191_v31  ;;  %v2196_v36 = vld [vmem:[#allocation31 + $0x38] sm:$0xff]  ;;  %v2874_v32 = vld [vmem:[#allocation32] ss:$0 sm:$0xff] }
 0xbe5   :  { %v1934_v41 = vmul.f32 0.7978846, %v1930_v37  ;;  %v1919_v42 = vmul.f32 %v1909_v38, %v1909_v38 }
 0xbe6   :  { %v1933_v43 = vmul.f32 0.7978846, %v1929_v39  ;;  %v1924_v44 = vmul.f32 %v1920_v40, %v1914_v35  ;;  %v2384_v39 = vld [vmem:[#allocation34 + $0x8] sm:$0xff] }
 0xbe7   :  { %3809 = vtanh.f32 %v1934_v41  ;;  %v1923_v45 = vmul.f32 %v1919_v42, %v1909_v38  ;;  %v2287_v41 = vld [vmem:[%s5186_s7] sm:$0xff]  ;;  %v2288_v42 = vld [vmem:[%s5186_s7 + $0x8] sm:$0xff] }
 0xbe8   :  { %v1928_v48 = vmul.f32 0.044715, %v1924_v44  ;;  %3811 = vtanh.f32 %v1933_v43  ;;  %v2289_v43 = vld [vmem:[%s5186_s7 + $0x10] sm:$0xff]  ;;  %v3603_v44 = vpack.c.bf16 %v2288_v42, %v2287_v41  ;;  %v2503_v41 = vld [vmem:[#allocation35 + $0x30] sm:$0xff]  ;;  %v2504_v42 = vld [vmem:[#allocation35 + $0x38] sm:$0xff] }
 0xbe9   :  { %v1927_v1 = vmul.f32 0.044715, %v1923_v45  ;;  %v2290_v45 = vld [vmem:[%s5186_s7 + $0x18] sm:$0xff] }
 0xbea   :  { %v1932_v4 = vadd.f32 %v1928_v48, %v1914_v35  ;;  %v3607_v48 = vpack.c.bf16 %v2290_v45, %v2289_v43  ;;  %3604 = vmatprep.subr.bf16.mxu1 %v3603_v44  ;;  %v3647_v43 = vpack.c.bf16 %v2504_v42, %v2503_v41 }
 0xbeb   :  { %v1931_v5 = vadd.f32 %v1927_v1, %v1909_v38  ;;  %v2291_v1 = vld [vmem:[%s5186_s7 + $0x20] sm:$0xff] }
 0xbec   :  { %v1936_v49 = vmul.f32 0.7978846, %v1932_v4  ;;  %v2292_v4 = vld [vmem:[%s5186_s7 + $0x28] sm:$0xff] }
 0xbed   :  { %v1935_v55 = vmul.f32 0.7978846, %v1931_v5  ;;  %v3611_v5 = vpack.c.bf16 %v2292_v4, %v2291_v1 }
 0xbee   :  { %3813 = vtanh.f32 %v1936_v49  ;;  %v2871_v49 = vld [vmem:[#allocation29] ss:$0 sm:$0xff] }
 0xbef   :  { %3815 = vtanh.f32 %v1935_v55 }
 0xbf1   :  { %v3810_v0 = vpop.eup %3809 }
 0xbf2   :  { %v3812_v59 = vpop.eup %3811  ;;  %v1942_v50 = vadd.f32 1.0, %v3810_v0 }
 0xbf3   :  { %v1941_v51 = vadd.f32 1.0, %v3812_v59 }
 0xbf4   :  { %v1946_v52 = vmul.f32 0.5, %v1942_v50 }
 0xbf5   :  { %v1945_v53 = vmul.f32 0.5, %v1941_v51 }
 0xbf6   :  { %v1950_v56 = vmul.f32 %v1946_v52, %v1904_v10 }
 0xbf7   :  { %v1949_v54 = vmul.f32 %v1945_v53, %v1899_v28 }
 0xbf8   :  { %v3814_v58 = vpop.eup %3813 }
 0xbf9   :  { %v3816_v60 = vpop.eup %3815  ;;  %3287 = vmatprep.mubr.f32.mxu1 %v1949_v54  ;;  %v1944_v63 = vadd.f32 1.0, %v3814_v58 }
 0xbfa   :  { %3288 = vmatmul.mubr.f32.vlgmr.msra.gmra.mrb[22].mxu1 %v1950_v56  ;;  %v1943_v61 = vadd.f32 1.0, %v3816_v60 }
 0xbfb   :  { %v1948_v62 = vmul.f32 0.5, %v1944_v63  ;;  %3606 = vmatpush3.bf16.msra.mxu1 %v3603_v44  ;;  %v2880_v44 = vld [vmem:[%s5187_s24] ss:$0 sm:$0xff] }
 0xbfc   :  { %v1947_v3 = vmul.f32 0.5, %v1943_v61  ;;  %3608 = vmatprep.subr.bf16.mxu1 %v3607_v48 }
 0xbfd   :  { %v1952_v7 = vmul.f32 %v1948_v62, %v1914_v35  ;;  %v2195_v35 = vld [vmem:[#allocation31 + $0x30] sm:$0xff] }
 0xbfe   :  { %v1951_v6 = vmul.f32 %v1947_v3, %v1909_v38  ;;  %v3599_v37 = vpack.c.bf16 %v2196_v36, %v2195_v35  ;;  %v2383_v38 = vld [vmem:[#allocation34] sm:$0xff]  ;;  %v2499_v35 = vld [vmem:[#allocation35 + $0x10] sm:$0xff] }
 0xbff   :  { %v3619_v40 = vpack.c.bf16 %v2384_v39, %v2383_v38  ;;  %3610 = vmatpush3.bf16.msra.mxu1 %v3607_v48  ;;  %v2501_v38 = vld [vmem:[#allocation35 + $0x20] sm:$0xff]  ;;  %v2502_v39 = vld [vmem:[#allocation35 + $0x28] sm:$0xff] }
 0xc00   :  { %3290 = vmatprep.mubr.f32.mxu1 %v1951_v6  ;;  %3612 = vmatprep.subr.bf16.mxu1 %v3611_v5 }
 0xc01   :  { %3291 = vmatmul.mubr.f32.gmra.mrb[24].mxu1 %v1952_v7 }
 0xc03   :  { %3614 = vmatpush3.bf16.msra.mxu1 %v3611_v5 }
 0xccd   :  { %v3289_v12 = vpop.f32.mrb[22].mxu1 }
 0xcce   :  { %v5044_v22 = vadd.f32 %v3289_v12, %v2870_v21  ;;  %v2042_v23 = vpop.f32.mrb[23].mxu1  ;;  %v2388_v12 = vld [vmem:[#allocation34 + $0x28] sm:$0xff] }
 0xccf   :  { %v5046_v24 = vadd.f32 %v2870_v21, %v2042_v23 }
 0xcd1   :  { %v5066_v20 = vadd.f32 %v5046_v24, %v4984_v47  ;;  %v5074_v24 = vadd.f32 %v5044_v22, %v4981_v46  ;;  %v2500_v46 = vld [vmem:[#allocation35 + $0x18] sm:$0xff] }
 0xcd4   :  { %v3292_v25 = vpop.f32.mrb[24].mxu1 }
 0xcd5   :  { %v2058_v17 = vadd.f32 %v3292_v25, %v2870_v21  ;;  %v2052_v26 = vpop.f32.mrb[25].mxu1  ;;  %v2389_v25 = vld [vmem:[#allocation34 + $0x30] sm:$0xff] }
 0xcd6   :  { %v2053_v10 = vadd.f32 %v2870_v21, %v2052_v26  ;;  %v2387_v21 = vld [vmem:[#allocation34 + $0x20] sm:$0xff] }
 0xcd7   :  { %v5052_v28 = vadd.f32 %v2058_v17, %v4994_v2  ;;  %v2194_v2 = vld [vmem:[#allocation31 + $0x28] sm:$0xff]  ;;  %v3627_v23 = vpack.c.bf16 %v2388_v12, %v2387_v21  ;;  %v2390_v17 = vld [vmem:[#allocation34 + $0x38] sm:$0xff] }
 0xcd8   :  { %v5049_v27 = vadd.f32 %v2053_v10, %v4991_v57  ;;  %v2193_v57 = vld [vmem:[#allocation31 + $0x20] sm:$0xff]  ;;  %v3631_v47 = vpack.c.bf16 %v2390_v17, %v2389_v25  ;;  %v2294_v10 = vld [vmem:[%s5186_s7 + $0x38] sm:$0xff] }
 0xcd9   :  { %v3595_v34 = vpack.c.bf16 %v2194_v2, %v2193_v57  ;;  %v2293_v26 = vld [vmem:[%s5186_s7 + $0x30] sm:$0xff]  ;;  %v2602_v12 = vld [vmem:[%s4633_s17 + $0x38] sm:$0xff] }
 0xcda   :  { %3309 = vmatprep.mubr.msk.f32.mxu0 %vm663_vm2, %v5049_v27  ;;  %v3615_v29 = vpack.c.bf16 %v2294_v10, %v2293_v26  ;;  %v2601_v21 = vld [vmem:[%s4633_s17 + $0x30] sm:$0xff] }
 0xcdb   :  { %3310 = vmatmul.mubr.msk.f32.vlgmr.msra.gmra.mrb[18].mxu0 %vm663_vm2, %v5052_v28 }
 0xcdc   :  { %3590 = vmatpush3.bf16.msra.mxu0 %v3587_v16  ;;  %3616 = vmatprep.subr.bf16.mxu1 %v3615_v29  ;;  %v2498_v16 = vld [vmem:[#allocation35 + $0x8] sm:$0xff] }
 0xcdd   :  { %3592 = vmatprep.subr.bf16.mxu0 %v3591_v33  ;;  %3618 = vmatpush3.bf16.msra.mxu1 %v3615_v29  ;;  %v3635_v31 = vpack.c.bf16 %v2498_v16, %v2497_v30 }
 0xcdf   :  { %3636 = vmatprep.subr.bf16.mxu1 %v3635_v31 }
 0xce0   :  { %3594 = vmatpush3.bf16.msra.mxu0 %v3591_v33 }
 0xce1   :  { %3596 = vmatprep.subr.bf16.mxu0 %v3595_v34 }
 0xce4   :  { %3598 = vmatpush3.bf16.msra.mxu0 %v3595_v34 }
 0xce5   :  { %3600 = vmatprep.subr.bf16.mxu0 %v3599_v37 }
 0xce8   :  { %3602 = vmatpush3.bf16.msra.mxu0 %v3599_v37  ;;  %v3639_v37 = vpack.c.bf16 %v2500_v46, %v2499_v35 }
 0xce9   :  { %3620 = vmatprep.subr.bf16.mxu0 %v3619_v40 }
 0xdae   :  { %v3311_v55 = vpop.f32.mrb[18].mxu0 }
 0xdaf   :  { %v2168_v0 = vadd.f32 %v3311_v55, %v2871_v49  ;;  %v2162_v59 = vpop.f32.mrb[19].mxu0 }
 0xdb0   :  { %v2163_v50 = vadd.f32 %v2871_v49, %v2162_v59 }
 0xdb1   :  { %v2172_v51 = vmul.f32 %v2168_v0, %v2168_v0 }
 0xdb2   :  { %v2171_v52 = vmul.f32 %v2163_v50, %v2163_v50 }
 0xdb3   :  { %v2174_v53 = vmul.f32 %v2172_v51, %v2168_v0 }
 0xdb4   :  { %v2173_v54 = vmul.f32 %v2171_v52, %v2163_v50 }
 0xdb5   :  { %v2176_v58 = vmul.f32 0.044715, %v2174_v53 }
 0xdb6   :  { %v2175_v56 = vmul.f32 0.044715, %v2173_v54 }
 0xdb7   :  { %v2178_v60 = vadd.f32 %v2176_v58, %v2168_v0 }
 0xdb8   :  { %v2177_v63 = vadd.f32 %v2175_v56, %v2163_v50 }
 0xdb9   :  { %v2180_v61 = vmul.f32 0.7978846, %v2178_v60 }
 0xdba   :  { %v2179_v62 = vmul.f32 0.7978846, %v2177_v63 }
 0xdbb   :  { %3817 = vtanh.f32 %v2180_v61 }
 0xdbc   :  { %3819 = vtanh.f32 %v2179_v62 }
 0xdc5   :  { %v3818_v3 = vpop.eup %3817 }
 0xdc6   :  { %v3820_v6 = vpop.eup %3819  ;;  %v2184_v7 = vadd.f32 1.0, %v3818_v3 }
 0xdc7   :  { %v2183_v8 = vadd.f32 1.0, %v3820_v6 }
 0xdc8   :  { %v2186_v9 = vmul.f32 0.5, %v2184_v7  ;;  %v2595_v7 = vld [vmem:[%s4633_s17] sm:$0xff] }
 0xdc9   :  { %v2185_v11 = vmul.f32 0.5, %v2183_v8  ;;  %v2596_v8 = vld [vmem:[%s4633_s17 + $0x8] sm:$0xff] }
 0xdca   :  { %v2188_v18 = vmul.f32 %v2186_v9, %v2168_v0  ;;  %v2597_v9 = vld [vmem:[%s4633_s17 + $0x10] sm:$0xff] }
 0xdcb   :  { %v2187_v15 = vmul.f32 %v2185_v11, %v2163_v50  ;;  %v3651_v11 = vpack.c.bf16 %v2596_v8, %v2595_v7  ;;  %v3655_v14 = vpack.c.bf16 %v2598_v13, %v2597_v9 }
 0xdcd   :  { %3328 = vmatprep.mubr.msk.f32.mxu0 %vm663_vm2, %v2187_v15  ;;  %v2599_v15 = vld [vmem:[%s4633_s17 + $0x20] sm:$0xff] }
 0xdce   :  { %3329 = vmatmul.mubr.msk.f32.vlgmr.msra.gmra.mrb[20].mxu0 %vm663_vm2, %v2188_v18  ;;  %v2600_v18 = vld [vmem:[%s4633_s17 + $0x28] sm:$0xff]  ;;  %s5189_s17 = sld [smem:[#allocation69_spill]] }
 0xdcf   :  { %3622 = vmatpush3.bf16.msra.mxu0 %v3619_v40  ;;  %3366 = vmatprep.mubr.msk.f32.mxu0 %vm663_vm2, %v5066_v20  ;;  %v3643_v40 = vpack.c.bf16 %v2502_v39, %v2501_v38 }
 0xdd0   :  { %3624 = vmatprep.subr.bf16.mxu0 %v3623_v19 }
 0xdd3   :  { %3626 = vmatpush3.bf16.msra.mxu0 %v3623_v19  ;;  %v3659_v19 = vpack.c.bf16 %v2600_v18, %v2599_v15 }
 0xdd4   :  { %3628 = vmatprep.subr.bf16.mxu0 %v3627_v23 }
 0xdd7   :  { %3630 = vmatpush3.bf16.msra.mxu0 %v3627_v23  ;;  %v3663_v23 = vpack.c.bf16 %v2602_v12, %v2601_v21 }
 0xdd8   :  { %3632 = vmatprep.subr.bf16.mxu0 %v3631_v47 }
 0xddb   :  { %3634 = vmatpush3.bf16.msra.mxu0 %v3631_v47  ;;  %v2883_v47 = vld [vmem:[%s5188_s4] ss:$0 sm:$0xff] }
 0xddc   :  { %3652 = vmatprep.subr.bf16.mxu0 %v3651_v11 }
 0xdde   :  { %3367 = vmatmul.mubr.msk.f32.vlgmr.msra.gmra.mrb[22].mxu0 %vm663_vm2, %v5074_v24 }
 0xddf   :  { %3654 = vmatpush3.bf16.msra.mxu0 %v3651_v11 }
 0xde0   :  { %3656 = vmatprep.subr.bf16.mxu0 %v3655_v14 }
 0xde3   :  { %3658 = vmatpush3.bf16.msra.mxu0 %v3655_v14 }
 0xde4   :  { %3660 = vmatprep.subr.bf16.mxu0 %v3659_v19 }
 0xde7   :  { %3662 = vmatpush3.bf16.msra.mxu0 %v3659_v19 }
 0xde8   :  { %3664 = vmatprep.subr.bf16.mxu0 %v3663_v23 }
 0xdeb   :  { %3666 = vmatpush3.bf16.msra.mxu0 %v3663_v23 }
 0xea1   :  { %v3330_v33 = vpop.f32.mrb[20].mxu0 }
 0xea2   :  { %v2282_v57 = vadd.f32 %v3330_v33, %v2874_v32  ;;  %v2276_v2 = vpop.f32.mrb[21].mxu0 }
 0xea3   :  { %v2277_v34 = vadd.f32 %v2874_v32, %v2276_v2  ;;  %v2886_v32 = vld [vmem:[%s4638_s14] ss:$0 sm:$0xff]  ;;  %s4452_s14 = smov 64  }
 0xea4   :  { %v2286_v36 = vadd.f32 %v2282_v57, %v5052_v28 }
 0xea5   :  { %v2285_v22 = vadd.f32 %v2277_v34, %v5049_v27 }
 0xea7   :  { %3347 = vmatprep.mubr.msk.f32.mxu1 %vm663_vm2, %v2285_v22 }
 0xea8   :  { %3348 = vmatmul.mubr.msk.f32.vlgmr.msra.gmra.mrb[26].mxu1 %vm663_vm2, %v2286_v36 }
 0xea9   :  { %3638 = vmatpush3.bf16.msra.mxu1 %v3635_v31 }
 0xeaa   :  { %3640 = vmatprep.subr.bf16.mxu1 %v3639_v37 }
 0xead   :  { %3642 = vmatpush3.bf16.msra.mxu1 %v3639_v37 }
 0xeae   :  { %3644 = vmatprep.subr.bf16.mxu1 %v3643_v40 }
 0xeb1   :  { %v3368_v45 = vpop.f32.mrb[22].mxu0  ;;  %3646 = vmatpush3.bf16.msra.mxu1 %v3643_v40 }
 0xeb2   :  { %v2476_v48 = vadd.f32 %v3368_v45, %v2880_v44  ;;  %v2470_v1 = vpop.f32.mrb[23].mxu0  ;;  %3648 = vmatprep.subr.bf16.mxu1 %v3647_v43 }
 0xeb3   :  { %v2471_v4 = vadd.f32 %v2880_v44, %v2470_v1 }
 0xeb4   :  { %v2480_v5 = vmul.f32 %v2476_v48, %v2476_v48 }
 0xeb5   :  { %v2479_v49 = vmul.f32 %v2471_v4, %v2471_v4  ;;  %3650 = vmatpush3.bf16.msra.mxu1 %v3647_v43 }
 0xeb6   :  { %v2482_v55 = vmul.f32 %v2480_v5, %v2476_v48 }
 0xeb7   :  { %v2481_v0 = vmul.f32 %v2479_v49, %v2471_v4 }
 0xeb8   :  { %v2484_v59 = vmul.f32 0.044715, %v2482_v55  ;;  %v2877_v55 = vld [vmem:[%s5189_s17] ss:$0 sm:$0xff] }
 0xeb9   :  { %v2483_v50 = vmul.f32 0.044715, %v2481_v0 }
 0xeba   :  { %v2486_v51 = vadd.f32 %v2484_v59, %v2476_v48 }
 0xebb   :  { %v2485_v52 = vadd.f32 %v2483_v50, %v2471_v4 }
 0xebc   :  { %v2488_v53 = vmul.f32 0.7978846, %v2486_v51 }
 0xebd   :  { %v2487_v54 = vmul.f32 0.7978846, %v2485_v52 }
 0xebe   :  { %3821 = vtanh.f32 %v2488_v53 }
 0xebf   :  { %3823 = vtanh.f32 %v2487_v54 }
 0xec8   :  { %v3822_v58 = vpop.eup %3821 }
 0xec9   :  { %v3824_v56 = vpop.eup %3823  ;;  %v2492_v60 = vadd.f32 1.0, %v3822_v58 }
 0xeca   :  { %v2491_v63 = vadd.f32 1.0, %v3824_v56 }
 0xecb   :  { %v2494_v61 = vmul.f32 0.5, %v2492_v60 }
 0xecc   :  { %v2493_v62 = vmul.f32 0.5, %v2491_v63 }
 0xecd   :  { %v2496_v6 = vmul.f32 %v2494_v61, %v2476_v48 }
 0xece   :  { %v2495_v3 = vmul.f32 %v2493_v62, %v2471_v4 }
 0xed0   :  { %3385 = vmatprep.mubr.msk.f32.mxu1 %vm663_vm2, %v2495_v3 }
 0xed1   :  { %3386 = vmatmul.mubr.msk.f32.vlgmr.msra.gmra.mrb[28].mxu1 %vm663_vm2, %v2496_v6 }
 0xf7b   :  { %v3349_v25 = vpop.f32.mrb[26].mxu1 }
 0xf7c   :  { %v2374_v17 = vpop.f32.mrb[27].mxu1  ;;  %v2380_v0 = vadd.f32 %v3349_v25, %v2877_v55 }
 0xf7d   :  { %v2375_v59 = vadd.f32 %v2877_v55, %v2374_v17 }
 0xfa4   :  { %v3387_v26 = vpop.f32.mrb[28].mxu1 }
 0xfa5   :  { %v2590_v10 = vadd.f32 %v3387_v26, %v2883_v47  ;;  %v2584_v29 = vpop.f32.mrb[29].mxu1 }
 0xfa6   :  { %v2585_v30 = vadd.f32 %v2883_v47, %v2584_v29 }
 0xfa7   :  { %v2594_v31 = vadd.f32 %v2590_v10, %v5074_v24 }
 0xfa8   :  { %v2593_v16 = vadd.f32 %v2585_v30, %v5066_v20 }
 0xfaa   :  { %3404 = vmatprep.mubr.msk.f32.mxu0 %vm663_vm2, %v2593_v16 }
 0xfab   :  { %3405 = vmatmul.mubr.msk.f32.vlgmr.msra.gmra.mrb[24].mxu0 %vm663_vm2, %v2594_v31 }
0x107e   :  { %v3406_v33 = vpop.f32.mrb[24].mxu0 }
0x107f   :  { %v2688_v57 = vadd.f32 %v3406_v33, %v2886_v32  ;;  %v2682_v2 = vpop.f32.mrb[25].mxu0 }
0x1080   :  { %v2683_v34 = vadd.f32 %v2886_v32, %v2682_v2 }
0x1081   :  { %v2694_v35 = vsel %vm556_vm0, %v2688_v57, -inf }
0x1082   :  { %2695 = vmax.xlane.f32.xlu1 %v2694_v35  ;;  %v2691_v46 = vsel %vm556_vm0, %v2683_v34, -inf }
0x1083   :  { %2692 = vmax.xlane.f32.xlu0 %v2691_v46 }
0x110f   :  { %v2696_v22 = vpop.xlane.xlu1 %2695 }
0x1110   :  { %v2698_v36 = vsub.f32 %v2688_v57, %v2696_v22  ;;  %v2693_v37 = vpop.xlane.xlu0 %2692 }
0x1111   :  { %v2697_v38 = vsub.f32 %v2683_v34, %v2693_v37 }
0x1112   :  { %v2701_v39 = vmul.f32 1.442695, %v2698_v36 }
0x1113   :  { %v2699_v40 = vmul.f32 1.442695, %v2697_v38 }
0x1114   :  { %3825 = vpow2.f32 %v2701_v39 }
0x1115   :  { %3827 = vpow2.f32 %v2699_v40 }
0x111e   :  { %v3826_v41 = vpop.eup %3825 }
0x111f   :  { %v3828_v42 = vpop.eup %3827  ;;  %v2706_v43 = vsel %vm556_vm0, %v3826_v41, 0.0 }
0x1120   :  { %2707 = vadd.xlane.f32.xlu1 %v2706_v43  ;;  %v2703_v44 = vsel %vm556_vm0, %v3828_v42, 0.0 }
0x1121   :  { %2704 = vadd.xlane.f32.xlu0 %v2703_v44 }
0x11ad   :  { %v2708_v45 = vpop.xlane.xlu1 %2707 }
0x11ae   :  { %3829 = vrcp.f32 %v2708_v45  ;;  %v2705_v48 = vpop.xlane.xlu0 %2704 }
0x11af   :  { %3831 = vrcp.f32 %v2705_v48 }
0x11b8   :  { %v3830_v1 = vpop.eup %3829 }
0x11b9   :  { %v3832_v4 = vpop.eup %3831  ;;  %v2712_v5 = vmul.f32 %v3830_v1, %v3826_v41 }
0x11ba   :  { %v2711_v49 = vmul.f32 %v3832_v4, %v3828_v42 }
0x11bb   :  { %2717 = vrot.lane.b32.xlu1 %v2712_v5, %s4451_s1 }
0x11bc   :  { %2715 = vrot.lane.b32.xlu0 %v2711_v49, %s4451_s1 }
0x11bf   :  { %2067 = vrot.lane.b32.xlu1 %v5049_v27, %s4452_s14 }
0x11c3   :  { %2069 = vrot.lane.b32.xlu1 %v5052_v28, %s4452_s14 }
0x122d   :  { %v2718_v50 = vpop.permute.xlu1 %2717 }
0x122e   :  { %v2722_v51 = vsel %vm438_vm1, %v2380_v0, %v2718_v50  ;;  %v2716_v52 = vpop.permute.xlu0 %2715 }
0x122f   :  { %v2725_v53 = vsel %vm2723_vm4, %v2722_v51, 0.0  ;;  %v2721_v54 = vsel %vm438_vm1, %v2375_v59, %v2716_v52 }
0x1230   :  { %2727 = vst [vmem:[#allocation37 + $0x8] sm:$0xff] %v2725_v53  ;;  %v2724_v58 = vsel %vm2723_vm4, %v2721_v54, 0.0 }
0x1231   :  { %2726 = vst [vmem:[#allocation37] sm:$0xff] %v2724_v58  ;;  %v2068_v27 = vpop.permute.xlu1 %2067 }
0x1232   :  { %v2073_v28 = vsel %vm663_vm2, %v5066_v20, %v2068_v27 }
0x1233   :  { %4328 = shalt.err (!%p4325_p12)
}
0x1234   :  { %s4329_s30 = scalar_lea.hbm %s4643_s27, 256 }
0x1235   :  { %p4330_p13 = scmp.ne.s32.totalorder %s4643_s27, %s4329_s30  ;;  %p4333_p0 = scmp.lt.u32.totalorder %s4329_s30, %s4643_s27 }
0x1237   :  { %p4335_p1 = pnand %p4333_p0, %p4330_p13 }
0x1239   :  { %4338 = shalt.err (!%p4335_p1)
}
0x123a   :  { %2739 = dma.vmem_to_hbm [thread:$0]  %s2734_s0, 256, %s4643_s27, [#allocation4], %s4428_s18, %s4428_s18, %s4429_s22   ;;  %2075 = vst [vmem:[#allocation38] sm:$0xff] %v2073_v28  ;;  %v2070_v20 = vpop.permute.xlu1 %2069 }
0x123b   :  { %v2074_v56 = vsel %vm663_vm2, %v5074_v24, %v2070_v20  ;;  %s4339_s15 = scalar_lea.vmem %s2746_s10, 256  ;;  %p4344_p3 = scmp.lt.s32.totalorder %s2746_s10, %s2746_s10 }
0x123c   :  { %2076 = vst [vmem:[#allocation38 + $0x8] sm:$0xff] %v2074_v56  ;;  %p4340_p2 = scmp.ne.s32.totalorder %s2746_s10, %s4339_s15  ;;  %p4345_p4 = scmp.lt.s32.totalorder %s4339_s15, %s4339_s15 }
0x123e   :  { %p4346_p5 = por %p4345_p4, %p4344_p3 }
0x1240   :  { %p4347_p6 = pnand %p4346_p5, %p4340_p2 }
0x1242   :  { %4350 = shalt.err (!%p4347_p6)
}
0x1243   :  { %s4351_s5 = scalar_lea.hbm %s4648_s6, 256 }
0x1244   :  { %p4352_p7 = scmp.ne.s32.totalorder %s4648_s6, %s4351_s5  ;;  %p4355_p8 = scmp.lt.u32.totalorder %s4351_s5, %s4648_s6 }
0x1246   :  { %p4357_p9 = pnand %p4355_p8, %p4352_p7 }
0x1248   :  { %4360 = shalt.err (!%p4357_p9)
}
0x1249   :  { %2751 = dma.vmem_to_hbm [thread:$0]  %s2746_s10, 256, %s4648_s6, [#allocation39], %s4428_s18, %s4428_s18, %s4429_s22  }
0x124a   :  { %4385 = dma.done.wait [#allocation4], 256  }
0x124b   :  { %4386 = vsyncadd [#allocation4], 4294967040 }
0x124c   :  { %4387 = dma.done.wait [#allocation39], 256  }
0x124d   :  { %4388 = vsyncadd [#allocation39], 4294967040 }
0x124e   :  { %2758 = vsyncpa [#allocation3], 1 }
0x124f   :  { %2759 = vsyncpa [#allocation6], 1 }
0x1250   :  { %2760 = vsyncpa [#allocation9], 1 }
0x1251   :  { %2761 = vsyncpa [#allocation12], 1 }
0x1252   :  { %2762 = vsyncpa [#allocation15], 1 }
0x1253   :  { %2763 = vsyncpa [#allocation18], 1 }
0x1254   :  { %2764 = vsyncpa [#allocation21], 1 }
0x1255   :  { %2765 = vsyncpa [#allocation24], 1 }
0x1256   :  { %2766 = vsyncpa [#allocation27], 1 }
0x1257   :  { %2767 = vsyncpa [#allocation30], 1 }
0x1258   :  { %2768 = vsyncpa [#allocation33], 1 }
0x1259   :  { %2769 = vsyncpa [#allocation36], 1 }
0x125a   :  { %2770 = vsyncpa [#allocation4], 1 }
0x125b   :  { %2771 = vsyncpa [#allocation39], 1 }

</bundles_post_ra>
